<compile_context>
chip_gen: v5e
topology: v5e:2x2
jax: 0.10.0
libtpu: 0.0.40
codegen_flags: <defaults>
</compile_context>

<pallas_src>
import functools

import jax
import jax.numpy as jnp
from jax.experimental import pallas as pl
from jax.experimental.pallas import tpu as pltpu

N_EMBD = 256
HIDDEN = 4 * N_EMBD
DROPOUT_P = 0.1
_KEEP_SCALE = 1.0 / (1.0 - DROPOUT_P)
_DROP_THRESH_I31 = int(round(DROPOUT_P * float(1 << 31)))   # compare in int32


def _round_up(x, m):
    return (x + m - 1) // m * m


def ffn_kernel(seed_ref, x_ref, w1_ref, b1_ref, w2_ref, b2_ref, o_ref,
               *, train: bool, tm: int):
    # ---- Linear 1 (bf16 MXU, f32 acc) + bias + ReLU (f32 epilogue) ----
    h = jnp.dot(x_ref[...], w1_ref[...], preferred_element_type=jnp.float32)
    h = jnp.maximum(h + b1_ref[...], 0.0)

    # ---- Linear 2 (cast activations back to bf16 for the MXU) ----
    y = jnp.dot(h.astype(jnp.bfloat16), w2_ref[...],
                preferred_element_type=jnp.float32)
    y = y + b2_ref[...]

    if train:
        # Counter-based hash dropout: deterministic given (seed, global index),
        # identical regardless of tiling, one integer threshold compare.
        n_cols = y.shape[1]
        rows = jax.lax.broadcasted_iota(jnp.int32, y.shape, 0)
        cols = jax.lax.broadcasted_iota(jnp.int32, y.shape, 1)
        row_off = pl.program_id(0) * tm
        idx = (rows + row_off) * n_cols + cols

        u = idx.astype(jnp.uint32)
        u = u * jnp.uint32(0x9E3779B9) + seed_ref[0].astype(jnp.uint32)
        u = u ^ (u >> 16)
        u = u * jnp.uint32(0x7FEB352D)
        u = u ^ (u >> 15)
        u = u * jnp.uint32(0x846CA68B)
        u = u ^ (u >> 16)
        # top 31 bits -> non-negative int32, signed compare (safe everywhere)
        r = (u >> 1).astype(jnp.int32)
        keep = r >= jnp.int32(_DROP_THRESH_I31)
        y = jnp.where(keep, y * _KEEP_SCALE, 0.0)

    o_ref[...] = y.astype(o_ref.dtype)


def feed_forward(x, w1, b1, w2, b2, *, seed=0, train=False, tm=None):
    """x: (B, T, n_embd) float32. w1: (C, 4C), b1: (1, 4C), w2: (4C, C), b2: (1, C)."""
    B, T, C = x.shape
    hidden = w1.shape[1]
    M = B * T

    if tm is None:
        # 512-row tiles when there is enough work (multiple of 256 for the
        # v6e/v7x 256x256 MXU, multiple of 128 for v5e); otherwise just pad
        # the whole problem up to an 8-sublane multiple and use one tile.
        tm = 512 if M >= 512 else _round_up(M, 8)
    m_pad = _round_up(M, tm)
    grid = m_pad // tm

    x2 = x.reshape(M, C).astype(jnp.bfloat16)
    if m_pad != M:
        x2 = jnp.pad(x2, ((0, m_pad - M), (0, 0)))
    w1b = w1.astype(jnp.bfloat16)
    w2b = w2.astype(jnp.bfloat16)

    kernel = functools.partial(ffn_kernel, train=train, tm=tm)

    out = pl.pallas_call(
        kernel,
        out_shape=jax.ShapeDtypeStruct((m_pad, C), x.dtype),
        grid_spec=pltpu.PrefetchScalarGridSpec(
            num_scalar_prefetch=1,                     # seed -> SMEM
            grid=(grid,),
            in_specs=[
                pl.BlockSpec((tm, C), lambda i, s: (i, 0)),          # x tile
                pl.BlockSpec((C, hidden), lambda i, s: (0, 0)),      # w1 (resident)
                pl.BlockSpec((1, hidden), lambda i, s: (0, 0)),      # b1 (resident)
                pl.BlockSpec((hidden, C), lambda i, s: (0, 0)),      # w2 (resident)
                pl.BlockSpec((1, C), lambda i, s: (0, 0)),           # b2 (resident)
            ],
            out_specs=pl.BlockSpec((tm, C), lambda i, s: (i, 0)),
        ),
        compiler_params=pltpu.CompilerParams(
            dimension_semantics=("parallel",)),        # megacore on v7x
    )(jnp.array([seed], jnp.int32), x2, w1b, b1, w2b, b2)

    return out[:M].reshape(B, T, C)


def init_params(key):
    """Deterministic init matching nn.Linear default (uniform +-1/sqrt(fan_in))."""
    k1, k2, k3, k4 = jax.random.split(key, 4)
    lim1 = 1.0 / (N_EMBD ** 0.5)
    lim2 = 1.0 / (HIDDEN ** 0.5)
    w1 = jax.random.uniform(k1, (N_EMBD, HIDDEN), jnp.float32, -lim1, lim1)
    b1 = jax.random.uniform(k2, (1, HIDDEN), jnp.float32, -lim1, lim1)
    w2 = jax.random.uniform(k3, (HIDDEN, N_EMBD), jnp.float32, -lim2, lim2)
    b2 = jax.random.uniform(k4, (1, N_EMBD), jnp.float32, -lim2, lim2)
    return w1, b1, w2, b2


if __name__ == "__main__":
    key = jax.random.PRNGKey(0)
    pkey, xkey = jax.random.split(key)
    w1, b1, w2, b2 = init_params(pkey)

    B, T = 2, 8
    x = jax.random.normal(xkey, (B, T, N_EMBD), jnp.float32)

    # ---- Eval mode (dropout = identity) ----
    y = jax.block_until_ready(feed_forward(x, w1, b1, w2, b2, seed=0, train=False))
    assert y.shape == (B, T, N_EMBD)

    # Reference mimicking the kernel's bf16-operand / f32-accumulate matmuls.
    xb = x.reshape(-1, N_EMBD).astype(jnp.bfloat16)
    ref_h = jnp.maximum(
        jnp.dot(xb, w1.astype(jnp.bfloat16), preferred_element_type=jnp.float32) + b1, 0.0)
    ref = jnp.dot(ref_h.astype(jnp.bfloat16), w2.astype(jnp.bfloat16),
                  preferred_element_type=jnp.float32) + b2
    ref = ref.reshape(B, T, N_EMBD)
    assert jnp.allclose(y, ref, atol=2e-3, rtol=2e-3), "mismatch vs bf16 reference"

    # Sanity vs full-f32 reference (looser: bf16 operand rounding).
    ref32 = (jnp.maximum(x.reshape(-1, N_EMBD) @ w1 + b1, 0.0) @ w2 + b2).reshape(B, T, N_EMBD)
    assert jnp.allclose(y, ref32, atol=5e-2, rtol=5e-2), "mismatch vs f32 reference"

    # ---- Train mode (deterministic hash dropout) ----
    y_tr = jax.block_until_ready(feed_forward(x, w1, b1, w2, b2, seed=123, train=True))
    assert y_tr.shape == (B, T, N_EMBD)
    zero_frac = float(jnp.mean((y_tr == 0).astype(jnp.float32)))
    assert 0.04 < zero_frac < 0.2, f"dropout zero fraction off: {zero_frac}"
    # Kept elements must equal the eval output scaled by 1/(1-p).
    scaled = y * _KEEP_SCALE
    assert jnp.allclose(jnp.where(y_tr == 0, 0.0, scaled), y_tr, atol=1e-4, rtol=1e-4)

    print("KERNEL_OK")
</pallas_src>

<mosaic_0001>
module attributes {stable_mosaic.version = 11 : i64} {
  func.func @ffn_kernel(%arg0: i32, %arg1: memref<1xi32, #tpu.memory_space<smem>>, %arg2: memref<16x256xbf16, #tpu.memory_space<vmem>>, %arg3: memref<256x1024xbf16, #tpu.memory_space<vmem>>, %arg4: memref<1x1024xf32, #tpu.memory_space<vmem>>, %arg5: memref<1024x256xbf16, #tpu.memory_space<vmem>>, %arg6: memref<1x256xf32, #tpu.memory_space<vmem>>, %arg7: memref<16x256xf32, #tpu.memory_space<vmem>>) attributes {dimension_semantics = [#tpu.dimension_semantics<parallel>], iteration_bounds = array<i64: 1>, scalar_prefetch = 1 : i64, scratch_operands = 0 : i64, tpu.core_type = #tpu.core_type<tc>, window_params = [{transform_indices = @transform_0, window_bounds = array<i64: 16, 256>}, {pipeline_mode = #tpu.pipeline_mode<synchronous>, transform_indices = @transform_1, window_bounds = array<i64: 256, 1024>}, {pipeline_mode = #tpu.pipeline_mode<synchronous>, transform_indices = @transform_2, window_bounds = array<i64: 1, 1024>}, {pipeline_mode = #tpu.pipeline_mode<synchronous>, transform_indices = @transform_3, window_bounds = array<i64: 1024, 256>}, {pipeline_mode = #tpu.pipeline_mode<synchronous>, transform_indices = @transform_4, window_bounds = array<i64: 1, 256>}, {transform_indices = @transform_5, window_bounds = array<i64: 16, 256>}]} {
    %c0 = arith.constant 0 : index
    %c0_0 = arith.constant 0 : index
    %0 = vector.load %arg2[%c0, %c0_0] : memref<16x256xbf16, #tpu.memory_space<vmem>>, vector<16x256xbf16>
    %c0_1 = arith.constant 0 : index
    %c0_2 = arith.constant 0 : index
    %1 = vector.load %arg3[%c0_1, %c0_2] : memref<256x1024xbf16, #tpu.memory_space<vmem>>, vector<256x1024xbf16>
    %cst = arith.constant dense<0.000000e+00> : vector<16x1024xf32>
    %2 = tpu.matmul %0, %1, %cst {dimension_numbers = #tpu.dot_dimension_numbers<[1], [0], [0], [1], [0, 0, 1, 1], [], []>} : vector<16x256xbf16>, vector<256x1024xbf16>, vector<16x1024xf32> -> vector<16x1024xf32>
    %c0_3 = arith.constant 0 : index
    %c0_4 = arith.constant 0 : index
    %3 = vector.load %arg4[%c0_3, %c0_4] : memref<1x1024xf32, #tpu.memory_space<vmem>>, vector<1x1024xf32>
    %4 = vector.broadcast %3 : vector<1x1024xf32> to vector<16x1024xf32>
    %5 = arith.addf %2, %4 : vector<16x1024xf32>
    %cst_5 = arith.constant 0.000000e+00 : f32
    %6 = vector.broadcast %cst_5 : f32 to vector<16x1024xf32>
    %7 = arith.maximumf %5, %6 : vector<16x1024xf32>
    %8 = arith.truncf %7 : vector<16x1024xf32> to vector<16x1024xbf16>
    %c0_6 = arith.constant 0 : index
    %c0_7 = arith.constant 0 : index
    %9 = vector.load %arg5[%c0_6, %c0_7] : memref<1024x256xbf16, #tpu.memory_space<vmem>>, vector<1024x256xbf16>
    %cst_8 = arith.constant dense<0.000000e+00> : vector<16x256xf32>
    %10 = tpu.matmul %8, %9, %cst_8 {dimension_numbers = #tpu.dot_dimension_numbers<[1], [0], [0], [1], [0, 0, 1, 1], [], []>} : vector<16x1024xbf16>, vector<1024x256xbf16>, vector<16x256xf32> -> vector<16x256xf32>
    %c0_9 = arith.constant 0 : index
    %c0_10 = arith.constant 0 : index
    %11 = vector.load %arg6[%c0_9, %c0_10] : memref<1x256xf32, #tpu.memory_space<vmem>>, vector<1x256xf32>
    %12 = vector.broadcast %11 : vector<1x256xf32> to vector<16x256xf32>
    %13 = arith.addf %10, %12 : vector<16x256xf32>
    %c0_11 = arith.constant 0 : index
    %c0_12 = arith.constant 0 : index
    %14 = vector.load %arg7[%c0_11, %c0_12] : memref<16x256xf32, #tpu.memory_space<vmem>>, vector<16x256xf32>
    tpu.vector_store %arg7[%c0_11, %c0_12], %13 {strides = array<i32>} : memref<16x256xf32, #tpu.memory_space<vmem>>, vector<16x256xf32>,
    return
  }
  func.func @transform_0(%arg0: i32, %arg1: memref<1xi32, #tpu.memory_space<smem>>) -> (i32, i32) {
    %c0_i32 = arith.constant 0 : i32
    %c0_i32_0 = arith.constant 0 : i32
    return %arg0, %c0_i32 : i32, i32
  }
  func.func @transform_1(%arg0: i32, %arg1: memref<1xi32, #tpu.memory_space<smem>>) -> (i32, i32) {
    %c0_i32 = arith.constant 0 : i32
    %c0_i32_0 = arith.constant 0 : i32
    %c0_i32_1 = arith.constant 0 : i32
    return %c0_i32, %c0_i32_0 : i32, i32
  }
  func.func @transform_2(%arg0: i32, %arg1: memref<1xi32, #tpu.memory_space<smem>>) -> (i32, i32) {
    %c0_i32 = arith.constant 0 : i32
    %c0_i32_0 = arith.constant 0 : i32
    %c0_i32_1 = arith.constant 0 : i32
    return %c0_i32, %c0_i32_0 : i32, i32
  }
  func.func @transform_3(%arg0: i32, %arg1: memref<1xi32, #tpu.memory_space<smem>>) -> (i32, i32) {
    %c0_i32 = arith.constant 0 : i32
    %c0_i32_0 = arith.constant 0 : i32
    %c0_i32_1 = arith.constant 0 : i32
    return %c0_i32, %c0_i32_0 : i32, i32
  }
  func.func @transform_4(%arg0: i32, %arg1: memref<1xi32, #tpu.memory_space<smem>>) -> (i32, i32) {
    %c0_i32 = arith.constant 0 : i32
    %c0_i32_0 = arith.constant 0 : i32
    %c0_i32_1 = arith.constant 0 : i32
    return %c0_i32, %c0_i32_0 : i32, i32
  }
  func.func @transform_5(%arg0: i32, %arg1: memref<1xi32, #tpu.memory_space<smem>>) -> (i32, i32) {
    %c0_i32 = arith.constant 0 : i32
    %c0_i32_0 = arith.constant 0 : i32
    return %arg0, %c0_i32 : i32, i32
  }
}

</mosaic_0001>

<bundles_post_ra>
// kernel: tpu_custom_call.1
= control target key start
LH: loop header
LB: loop body
LE: loop exit
PB: predicated region body
PF: predicated region fallthrough
CT: control target
= control target key end

     0   :  { %12 = vsyncpa [#allocation5], 0  ;;  %s3708_s0 = inlined_call_operand.<no memory space> [shape: s32[1], index: 0, kind: input, shape index: {}]   ;;  %s3709_s1 = inlined_call_operand.hbm [shape: bf16[16,256], index: 1, kind: input, shape index: {}]   ;;  %s3710_s2 = inlined_call_operand.hbm [shape: bf16[256,1024], index: 2, kind: input, shape index: {}]   ;;  %s3711_s3 = inlined_call_operand.hbm [shape: f32[1,1024], index: 3, kind: input, shape index: {}]   ;;  %s3712_s4 = inlined_call_operand.hbm [shape: bf16[1024,256], index: 4, kind: input, shape index: {}]   ;;  %s3713_s5 = inlined_call_operand.vmem [shape: f32[1,256], index: 5, kind: input, shape index: {}]   ;;  %s3714_s6 = inlined_call_operand.hbm [shape: f32[16,256], index: 6, kind: output, shape index: {}]  }
   0x1   :  { %13 = vsyncpa [#allocation8], 0 }
   0x2   :  { %14 = vsyncpa [#allocation11], 0  ;;  %s33_s22 = sshll.u32 %s3710_s2, 4  ;;  %s34_s22 = int_to_ptr.hbm [resolvable:$true] %s33_s22 }
   0x3   :  { %15 = vsyncpa [#allocation6], 0  ;;  %s3582_s23 = smov [#allocation7]   ;;  %s20_s27 = sshll.u32 %s3709_s1, 4  ;;  %s21_s27 = int_to_ptr.hbm [resolvable:$true] %s20_s27 }
   0x4   :  { %s35_s24 = sshll.u32 %s3582_s23, 4  ;;  %s3583_s28 = smov 512   ;;  %s36_s24 = int_to_ptr.vmem [resolvable:$true] %s35_s24 }
   0x5   :  { %s3584_s29 = smov 32   ;;  %s3585_s30 = smov [#allocation4]  }
   0x6   :  { %41 = dma.hbm_to_vmem [thread:$0]  %s34_s22, 16384, %s36_s24, [#allocation8], %s3583_s28, %s3583_s28, %s3584_s29  }
   0x7   :  { %s22_s7 = sshll.u32 %s3585_s30, 4  ;;  %s3586_s8 = smov 128   ;;  %s23_s7 = int_to_ptr.vmem [resolvable:$true] %s22_s7 }
   0x8   :  { %s3587_s9 = smov 8   ;;  %s47_s11 = sshll.u32 %s3711_s3, 4  ;;  %s48_s11 = int_to_ptr.hbm [resolvable:$true] %s47_s11 }
   0x9   :  { %28 = dma.hbm_to_vmem [thread:$0]  %s21_s27, 256, %s23_s7, [#allocation5], %s3586_s8, %s3586_s8, %s3587_s9  }
   0xa   :  { %s3588_s12 = smov [#allocation9]   ;;  %s57_s15 = sshll.u32 %s3712_s4, 4  ;;  %s58_s15 = int_to_ptr.hbm [resolvable:$true] %s57_s15 }
   0xb   :  { %s49_s13 = sshll.u32 %s3588_s12, 4  ;;  %s3589_s16 = smov [#allocation10]   ;;  %s50_s13 = int_to_ptr.vmem [resolvable:$true] %s49_s13 }
   0xc   :  { %52 = dma.hbm_to_vmem [thread:$0]  %s48_s11, 128, %s50_s13, [#allocation8]  }
   0xd   :  { %s59_s17 = sshll.u32 %s3589_s16, 4  ;;  %s60_s17 = int_to_ptr.vmem [resolvable:$true] %s59_s17 }
   0xe   :  { %65 = dma.hbm_to_vmem [thread:$0]  %s58_s15, 16384, %s60_s17, [#allocation11], %s3586_s8, %s3586_s8, %s3587_s9  }
   0xf   :  { %3574 = dma.done.wait [#allocation5], 256  }
  0x10   :  { %3575 = vsyncadd [#allocation5], 4294967040 }
  0x11   :  { %3576 = dma.done.wait [#allocation8], 16512  }
  0x12   :  { %3577 = vsyncadd [#allocation8], 4294950784 }
  0x13   :  { %3578 = dma.done.wait [#allocation11], 16384  }
  0x14   :  { %3579 = vsyncadd [#allocation11], 4294950912  ;;  %v2387_v0 = vld [vmem:[#allocation7 + $0x1c0] sm:$0xf]  ;;  %v3243_v5 = vld [vmem:[#allocation7 + $0x1c4] sm:$0xf] }
  0x15   :  { %v3247_v1 = vld [vmem:[#allocation7 + $0x1dc] sm:$0xf0]  ;;  %v2389_v6 = vld [vmem:[#allocation7 + $0x1e0] sm:$0xf0]  ;;  %s2138_s0 = sshll.u32 %s3714_s6, 4  ;;  %s3591_s21 = smov 256   ;;  %s2139_s0 = int_to_ptr.hbm [resolvable:$true] %s2138_s0 }
  0x16   :  { %v2643_v2 = vld [vmem:[#allocation7 + $0x3c0] sm:$0xf]  ;;  %v2388_v3 = vor.u32 %v3247_v1, %v2387_v0  ;;  %v2392_v8 = vor.u32 %v3243_v5, %v2389_v6  ;;  %v3307_v9 = vld [vmem:[#allocation7 + $0x3c4] sm:$0xf]  ;;  %s3592_s22 = smov 16  }
  0x17   :  { %v3311_v4 = vld [vmem:[#allocation7 + $0x3dc] sm:$0xf0]  ;;  %v2645_v10 = vld [vmem:[#allocation7 + $0x3e0] sm:$0xf0] }
  0x18   :  { %v2644_v7 = vor.u32 %v3311_v4, %v2643_v2  ;;  %v2355_v11 = vld [vmem:[#allocation7 + $0x180] sm:$0xf]  ;;  %882 = vmatpush.bf16.msra.mxu0 %v2388_v3  ;;  %v2648_v12 = vor.u32 %v3307_v9, %v2645_v10  ;;  %910 = vmatpush.bf16.msra.mxu2 %v2392_v8  ;;  %v3235_v18 = vld [vmem:[#allocation7 + $0x184] sm:$0xf] }
  0x19   :  { %v3239_v13 = vld [vmem:[#allocation7 + $0x19c] sm:$0xf0]  ;;  %v2357_v19 = vld [vmem:[#allocation7 + $0x1a0] sm:$0xf0] }
  0x1a   :  { %v2611_v14 = vld [vmem:[#allocation7 + $0x380] sm:$0xf]  ;;  %896 = vmatpush.bf16.msra.mxu1 %v2644_v7  ;;  %v2356_v16 = vor.u32 %v3239_v13, %v2355_v11  ;;  %v3299_v20 = vld [vmem:[#allocation7 + $0x384] sm:$0xf]  ;;  %924 = vmatpush.bf16.msra.mxu3 %v2648_v12  ;;  %v2360_v21 = vor.u32 %v3235_v18, %v2357_v19 }
  0x1b   :  { %v3303_v15 = vld [vmem:[#allocation7 + $0x39c] sm:$0xf0]  ;;  %v2613_v22 = vld [vmem:[#allocation7 + $0x3a0] sm:$0xf0] }
  0x1c   :  { %v2612_v17 = vor.u32 %v3303_v15, %v2611_v14  ;;  %v2323_v23 = vld [vmem:[#allocation7 + $0x140] sm:$0xf]  ;;  %v2616_v25 = vor.u32 %v3299_v20, %v2613_v22  ;;  %v3227_v28 = vld [vmem:[#allocation7 + $0x144] sm:$0xf]  ;;  %883 = vmatpush.bf16.msra.mxu0 %v2356_v16  ;;  %911 = vmatpush.bf16.msra.mxu2 %v2360_v21 }
  0x1d   :  { %v3231_v24 = vld [vmem:[#allocation7 + $0x15c] sm:$0xf0]  ;;  %v2325_v30 = vld [vmem:[#allocation7 + $0x160] sm:$0xf0] }
  0x1e   :  { %v2579_v26 = vld [vmem:[#allocation7 + $0x340] sm:$0xf]  ;;  %v2324_v29 = vor.u32 %v3231_v24, %v2323_v23  ;;  %v3291_v31 = vld [vmem:[#allocation7 + $0x344] sm:$0xf]  ;;  %897 = vmatpush.bf16.msra.mxu1 %v2612_v17  ;;  %v2328_v34 = vor.u32 %v3227_v28, %v2325_v30  ;;  %925 = vmatpush.bf16.msra.mxu3 %v2616_v25  ;;  %v2395_v28 = vld [vmem:[#allocation7 + $0x1c8] sm:$0xf] }
  0x1f   :  { %v3295_v27 = vld [vmem:[#allocation7 + $0x35c] sm:$0xf0]  ;;  %v2581_v32 = vld [vmem:[#allocation7 + $0x360] sm:$0xf0]  ;;  %v2651_v30 = vld [vmem:[#allocation7 + $0x3c8] sm:$0xf] }
  0x20   :  { %v2580_v33 = vor.u32 %v3295_v27, %v2579_v26  ;;  %v2291_v35 = vld [vmem:[#allocation7 + $0x100] sm:$0xf]  ;;  %v2584_v38 = vor.u32 %v3291_v31, %v2581_v32  ;;  %v3219_v40 = vld [vmem:[#allocation7 + $0x104] sm:$0xf]  ;;  %884 = vmatpush.bf16.msra.mxu0 %v2324_v29  ;;  %912 = vmatpush.bf16.msra.mxu2 %v2328_v34  ;;  %v3248_v29 = vld [vmem:[#allocation7 + $0x1e4] sm:$0xf0] }
  0x21   :  { %v3223_v36 = vld [vmem:[#allocation7 + $0x11c] sm:$0xf0]  ;;  %v2293_v41 = vld [vmem:[#allocation7 + $0x120] sm:$0xf0]  ;;  %v3312_v32 = vld [vmem:[#allocation7 + $0x3e4] sm:$0xf0] }
  0x22   :  { %v2547_v37 = vld [vmem:[#allocation7 + $0x300] sm:$0xf]  ;;  %v3283_v42 = vld [vmem:[#allocation7 + $0x304] sm:$0xf]  ;;  %v2292_v44 = vor.u32 %v3223_v36, %v2291_v35  ;;  %898 = vmatpush.bf16.msra.mxu1 %v2580_v33  ;;  %v2296_v46 = vor.u32 %v3219_v40, %v2293_v41  ;;  %926 = vmatpush.bf16.msra.mxu3 %v2584_v38  ;;  %v3244_v33 = vld [vmem:[#allocation7 + $0x1cc] sm:$0xf]  ;;  %v2396_v40 = vor.u32 %v3248_v29, %v2395_v28 }
  0x23   :  { %v3287_v39 = vld [vmem:[#allocation7 + $0x31c] sm:$0xf0]  ;;  %v2549_v43 = vld [vmem:[#allocation7 + $0x320] sm:$0xf0]  ;;  %v2397_v34 = vld [vmem:[#allocation7 + $0x1e8] sm:$0xf0] }
  0x24   :  { %v2548_v45 = vor.u32 %v3287_v39, %v2547_v37  ;;  %v2259_v47 = vld [vmem:[#allocation7 + $0xc0] sm:$0xf]  ;;  %v2552_v50 = vor.u32 %v3283_v42, %v2549_v43  ;;  %v3211_v52 = vld [vmem:[#allocation7 + $0xc4] sm:$0xf]  ;;  %885 = vmatpush.bf16.msra.mxu0 %v2292_v44  ;;  %913 = vmatpush.bf16.msra.mxu2 %v2296_v46  ;;  %v3308_v37 = vld [vmem:[#allocation7 + $0x3cc] sm:$0xf]  ;;  %v2652_v43 = vor.u32 %v3312_v32, %v2651_v30 }
  0x25   :  { %v3215_v48 = vld [vmem:[#allocation7 + $0xdc] sm:$0xf0]  ;;  %v2261_v53 = vld [vmem:[#allocation7 + $0xe0] sm:$0xf0]  ;;  %v2653_v38 = vld [vmem:[#allocation7 + $0x3e8] sm:$0xf0]  ;;  %v2400_v44 = vor.u32 %v3244_v33, %v2397_v34 }
  0x26   :  { %v2515_v49 = vld [vmem:[#allocation7 + $0x2c0] sm:$0xf]  ;;  %v3275_v54 = vld [vmem:[#allocation7 + $0x2c4] sm:$0xf]  ;;  %v2260_v56 = vor.u32 %v3215_v48, %v2259_v47  ;;  %899 = vmatpush.bf16.msra.mxu1 %v2548_v45  ;;  %v2264_v58 = vor.u32 %v3211_v52, %v2261_v53  ;;  %927 = vmatpush.bf16.msra.mxu3 %v2552_v50  ;;  %v2363_v41 = vld [vmem:[#allocation7 + $0x188] sm:$0xf]  ;;  %v2656_v48 = vor.u32 %v3308_v37, %v2653_v38 }
  0x27   :  { %v3279_v51 = vld [vmem:[#allocation7 + $0x2dc] sm:$0xf0]  ;;  %v2517_v55 = vld [vmem:[#allocation7 + $0x2e0] sm:$0xf0]  ;;  %v3240_v42 = vld [vmem:[#allocation7 + $0x1a4] sm:$0xf0] }
  0x28   :  { %v2516_v57 = vor.u32 %v3279_v51, %v2515_v49  ;;  %v2227_v59 = vld [vmem:[#allocation7 + $0x80] sm:$0xf]  ;;  %v2520_v62 = vor.u32 %v3275_v54, %v2517_v55  ;;  %v3203_v0 = vld [vmem:[#allocation7 + $0x84] sm:$0xf]  ;;  %886 = vmatpush.bf16.msra.mxu0 %v2260_v56  ;;  %914 = vmatpush.bf16.msra.mxu2 %v2264_v58  ;;  %v2619_v45 = vld [vmem:[#allocation7 + $0x388] sm:$0xf]  ;;  %v2364_v55 = vor.u32 %v3240_v42, %v2363_v41 }
  0x29   :  { %v3207_v60 = vld [vmem:[#allocation7 + $0x9c] sm:$0xf0]  ;;  %v2229_v1 = vld [vmem:[#allocation7 + $0xa0] sm:$0xf0]  ;;  %v3304_v46 = vld [vmem:[#allocation7 + $0x3a4] sm:$0xf0] }
  0x2a   :  { %v2483_v61 = vld [vmem:[#allocation7 + $0x280] sm:$0xf]  ;;  %v3267_v2 = vld [vmem:[#allocation7 + $0x284] sm:$0xf]  ;;  %v2228_v4 = vor.u32 %v3207_v60, %v2227_v59  ;;  %900 = vmatpush.bf16.msra.mxu1 %v2516_v57  ;;  %v2232_v6 = vor.u32 %v3203_v0, %v2229_v1  ;;  %928 = vmatpush.bf16.msra.mxu3 %v2520_v62  ;;  %v3236_v47 = vld [vmem:[#allocation7 + $0x18c] sm:$0xf]  ;;  %v2620_v58 = vor.u32 %v3304_v46, %v2619_v45 }
  0x2b   :  { %v3271_v63 = vld [vmem:[#allocation7 + $0x29c] sm:$0xf0]  ;;  %v2485_v3 = vld [vmem:[#allocation7 + $0x2a0] sm:$0xf0]  ;;  %v2365_v49 = vld [vmem:[#allocation7 + $0x1a8] sm:$0xf0] }
  0x2c   :  { %v2484_v5 = vor.u32 %v3271_v63, %v2483_v61  ;;  %v2195_v7 = vld [vmem:[#allocation7 + $0x40] sm:$0xf]  ;;  %v2488_v10 = vor.u32 %v3267_v2, %v2485_v3  ;;  %v3195_v12 = vld [vmem:[#allocation7 + $0x44] sm:$0xf]  ;;  %887 = vmatpush.bf16.msra.mxu0 %v2228_v4  ;;  %915 = vmatpush.bf16.msra.mxu2 %v2232_v6  ;;  %v3300_v50 = vld [vmem:[#allocation7 + $0x38c] sm:$0xf]  ;;  %v2368_v59 = vor.u32 %v3236_v47, %v2365_v49 }
  0x2d   :  { %v3199_v8 = vld [vmem:[#allocation7 + $0x5c] sm:$0xf0]  ;;  %v2197_v13 = vld [vmem:[#allocation7 + $0x60] sm:$0xf0]  ;;  %v2621_v51 = vld [vmem:[#allocation7 + $0x3a8] sm:$0xf0] }
  0x2e   :  { %v2451_v9 = vld [vmem:[#allocation7 + $0x240] sm:$0xf]  ;;  %v3259_v14 = vld [vmem:[#allocation7 + $0x244] sm:$0xf]  ;;  %v2196_v16 = vor.u32 %v3199_v8, %v2195_v7  ;;  %901 = vmatpush.bf16.msra.mxu1 %v2484_v5  ;;  %v2200_v20 = vor.u32 %v3195_v12, %v2197_v13  ;;  %929 = vmatpush.bf16.msra.mxu3 %v2488_v10  ;;  %v2155_v52 = vld [vmem:[#allocation4] sm:$0xf]  ;;  %v2624_v0 = vor.u32 %v3300_v50, %v2621_v51 }
  0x2f   :  { %v3263_v11 = vld [vmem:[#allocation7 + $0x25c] sm:$0xf0]  ;;  %v2453_v15 = vld [vmem:[#allocation7 + $0x260] sm:$0xf0]  ;;  %v3186_v53 = vld [vmem:[#allocation4 + $0x4] sm:$0xf0] }
  0x30   :  { %v2163_v17 = vld [vmem:[#allocation7] sm:$0xf]  ;;  %v2452_v19 = vor.u32 %v3263_v11, %v2451_v9  ;;  %v3187_v23 = vld [vmem:[#allocation7 + $0x4] sm:$0xf]  ;;  %v2456_v24 = vor.u32 %v3259_v14, %v2453_v15  ;;  %888 = vmatpush.bf16.msra.mxu0 %v2196_v16  ;;  %916 = vmatpush.bf16.msra.mxu2 %v2200_v20  ;;  %v3185_v54 = vld [vmem:[#allocation4 + $0x4] sm:$0xf]  ;;  %v3640_v56 = vor.u32 %v3186_v53, %v2155_v52 }
  0x31   :  { %v3191_v18 = vld [vmem:[#allocation7 + $0x1c] sm:$0xf0]  ;;  %v2165_v25 = vld [vmem:[#allocation7 + $0x20] sm:$0xf0]  ;;  %v2157_v57 = vld [vmem:[#allocation4 + $0x8] sm:$0xf0] }
  0x32   :  { %v2419_v21 = vld [vmem:[#allocation7 + $0x200] sm:$0xf]  ;;  %v3251_v26 = vld [vmem:[#allocation7 + $0x204] sm:$0xf]  ;;  %v2164_v31 = vor.u32 %v3191_v18, %v2163_v17  ;;  %902 = vmatpush.bf16.msra.mxu1 %v2452_v19  ;;  %v2168_v36 = vor.u32 %v3187_v23, %v2165_v25  ;;  %930 = vmatpush.bf16.msra.mxu3 %v2456_v24  ;;  %v2331_v60 = vld [vmem:[#allocation7 + $0x148] sm:$0xf]  ;;  %v3642_v63 = vor.u32 %v3185_v54, %v2157_v57 }
  0x33   :  { %v3255_v22 = vld [vmem:[#allocation7 + $0x21c] sm:$0xf0]  ;;  %v2421_v27 = vld [vmem:[#allocation7 + $0x220] sm:$0xf0]  ;;  %v3232_v61 = vld [vmem:[#allocation7 + $0x164] sm:$0xf0] }
  0x34   :  { %v2420_v35 = vor.u32 %v3255_v22, %v2419_v21  ;;  %v2424_v39 = vor.u32 %v3251_v26, %v2421_v27  ;;  %889 = vmatpush.bf16.msra.mxu0 %v2164_v31  ;;  %917 = vmatpush.bf16.msra.mxu2 %v2168_v36  ;;  %v2587_v62 = vld [vmem:[#allocation7 + $0x348] sm:$0xf]  ;;  %v3228_v2 = vld [vmem:[#allocation7 + $0x14c] sm:$0xf]  ;;  %v2332_v6 = vor.u32 %v3232_v61, %v2331_v60 }
  0x35   :  { %v3296_v1 = vld [vmem:[#allocation7 + $0x364] sm:$0xf0]  ;;  %v2333_v3 = vld [vmem:[#allocation7 + $0x168] sm:$0xf0] }
  0x36   :  { %903 = vmatpush.bf16.msra.mxu1 %v2420_v35  ;;  %931 = vmatpush.bf16.msra.mxu3 %v2424_v39  ;;  %v3292_v4 = vld [vmem:[#allocation7 + $0x34c] sm:$0xf]  ;;  %v2588_v7 = vor.u32 %v3296_v1, %v2587_v62  ;;  %v2336_v8 = vor.u32 %v3228_v2, %v2333_v3  ;;  %v2299_v9 = vld [vmem:[#allocation7 + $0x108] sm:$0xf] }
  0x37   :  { %918 = vmatmul.bf16.vlgmr.msra.gmra.mxu2 %v3640_v56  ;;  %v2589_v5 = vld [vmem:[#allocation7 + $0x368] sm:$0xf0]  ;;  %890 = vmatmul.bf16.vlgmr.msra.gmra.mxu0 %v3640_v56  ;;  %v3224_v10 = vld [vmem:[#allocation7 + $0x124] sm:$0xf0] }
  0x38   :  { %938 = vmatpush.bf16.msrb.mxu0 %v2396_v40  ;;  %966 = vmatpush.bf16.msrb.mxu2 %v2400_v44  ;;  %v2555_v11 = vld [vmem:[#allocation7 + $0x308] sm:$0xf]  ;;  %v2592_v12 = vor.u32 %v3292_v4, %v2589_v5  ;;  %v3220_v14 = vld [vmem:[#allocation7 + $0x10c] sm:$0xf]  ;;  %v2300_v18 = vor.u32 %v3224_v10, %v2299_v9  ;;  %v2403_v4 = vld [vmem:[#allocation7 + $0x1d0] sm:$0xf] }
  0x39   :  { %932 = vmatmul.bf16.vlgmr.msra.gmra.mxu3 %v3642_v63  ;;  %904 = vmatmul.bf16.vlgmr.msra.gmra.mxu1 %v3642_v63  ;;  %v3288_v13 = vld [vmem:[#allocation7 + $0x324] sm:$0xf0]  ;;  %v2301_v15 = vld [vmem:[#allocation7 + $0x128] sm:$0xf0]  ;;  %v3249_v5 = vld [vmem:[#allocation7 + $0x1ec] sm:$0xf0] }
  0x3a   :  { %952 = vmatpush.bf16.msrb.mxu1 %v2652_v43  ;;  %980 = vmatpush.bf16.msrb.mxu3 %v2656_v48  ;;  %v3284_v16 = vld [vmem:[#allocation7 + $0x30c] sm:$0xf]  ;;  %v2556_v19 = vor.u32 %v3288_v13, %v2555_v11  ;;  %v2304_v20 = vor.u32 %v3220_v14, %v2301_v15  ;;  %v2267_v21 = vld [vmem:[#allocation7 + $0xc8] sm:$0xf]  ;;  %v3245_v9 = vld [vmem:[#allocation7 + $0x1d4] sm:$0xf] }
  0x3b   :  { %v2557_v17 = vld [vmem:[#allocation7 + $0x328] sm:$0xf0]  ;;  %v3216_v22 = vld [vmem:[#allocation7 + $0xe4] sm:$0xf0]  ;;  %v2405_v10 = vld [vmem:[#allocation7 + $0x1f0] sm:$0xf0] }
  0x3c   :  { %939 = vmatpush.bf16.msrb.mxu0 %v2364_v55  ;;  %967 = vmatpush.bf16.msrb.mxu2 %v2368_v59  ;;  %v2523_v23 = vld [vmem:[#allocation7 + $0x2c8] sm:$0xf]  ;;  %v2560_v24 = vor.u32 %v3284_v16, %v2557_v17  ;;  %v3212_v26 = vld [vmem:[#allocation7 + $0xcc] sm:$0xf]  ;;  %v2268_v30 = vor.u32 %v3216_v22, %v2267_v21  ;;  %v3309_v13 = vld [vmem:[#allocation7 + $0x3d4] sm:$0xf]  ;;  %v2404_v16 = vor.u32 %v3249_v5, %v2403_v4 }
  0x3d   :  { %v3280_v25 = vld [vmem:[#allocation7 + $0x2e4] sm:$0xf0]  ;;  %v2269_v27 = vld [vmem:[#allocation7 + $0xe8] sm:$0xf0]  ;;  %v2661_v14 = vld [vmem:[#allocation7 + $0x3f0] sm:$0xf0] }
  0x3e   :  { %953 = vmatpush.bf16.msrb.mxu1 %v2620_v58  ;;  %981 = vmatpush.bf16.msrb.mxu3 %v2624_v0  ;;  %v3276_v28 = vld [vmem:[#allocation7 + $0x2cc] sm:$0xf]  ;;  %v2524_v31 = vor.u32 %v3280_v25, %v2523_v23  ;;  %v2272_v32 = vor.u32 %v3212_v26, %v2269_v27  ;;  %v2235_v33 = vld [vmem:[#allocation7 + $0x88] sm:$0xf]  ;;  %v2627_v21 = vld [vmem:[#allocation7 + $0x390] sm:$0xf]  ;;  %v2664_v22 = vor.u32 %v3309_v13, %v2661_v14 }
  0x3f   :  { %v2525_v29 = vld [vmem:[#allocation7 + $0x2e8] sm:$0xf0]  ;;  %v3208_v34 = vld [vmem:[#allocation7 + $0xa4] sm:$0xf0]  ;;  %v3305_v23 = vld [vmem:[#allocation7 + $0x3ac] sm:$0xf0] }
  0x40   :  { %940 = vmatpush.bf16.msrb.mxu0 %v2332_v6  ;;  %968 = vmatpush.bf16.msrb.mxu2 %v2336_v8  ;;  %v2491_v35 = vld [vmem:[#allocation7 + $0x288] sm:$0xf]  ;;  %v2528_v36 = vor.u32 %v3276_v28, %v2525_v29  ;;  %v3204_v38 = vld [vmem:[#allocation7 + $0x8c] sm:$0xf]  ;;  %v2236_v42 = vor.u32 %v3208_v34, %v2235_v33  ;;  %v2659_v6 = vld [vmem:[#allocation7 + $0x3d0] sm:$0xf]  ;;  %v2628_v29 = vor.u32 %v3305_v23, %v2627_v21 }
  0x41   :  { %v3272_v37 = vld [vmem:[#allocation7 + $0x2a4] sm:$0xf0]  ;;  %v2237_v39 = vld [vmem:[#allocation7 + $0xa8] sm:$0xf0]  ;;  %v3313_v8 = vld [vmem:[#allocation7 + $0x3ec] sm:$0xf0] }
  0x42   :  { %954 = vmatpush.bf16.msrb.mxu1 %v2588_v7  ;;  %982 = vmatpush.bf16.msrb.mxu3 %v2592_v12  ;;  %v3268_v40 = vld [vmem:[#allocation7 + $0x28c] sm:$0xf]  ;;  %v2492_v43 = vor.u32 %v3272_v37, %v2491_v35  ;;  %v2240_v44 = vor.u32 %v3204_v38, %v2237_v39  ;;  %v2203_v45 = vld [vmem:[#allocation7 + $0x48] sm:$0xf]  ;;  %v2660_v17 = vor.u32 %v3313_v8, %v2659_v6  ;;  %v2373_v25 = vld [vmem:[#allocation7 + $0x1b0] sm:$0xf0] }
  0x43   :  { %v2493_v41 = vld [vmem:[#allocation7 + $0x2a8] sm:$0xf0]  ;;  %v3200_v46 = vld [vmem:[#allocation7 + $0x64] sm:$0xf0]  ;;  %v3301_v26 = vld [vmem:[#allocation7 + $0x394] sm:$0xf] }
  0x44   :  { %941 = vmatpush.bf16.msrb.mxu0 %v2300_v18  ;;  %969 = vmatpush.bf16.msrb.mxu2 %v2304_v20  ;;  %v2459_v47 = vld [vmem:[#allocation7 + $0x248] sm:$0xf]  ;;  %v2496_v48 = vor.u32 %v3268_v40, %v2493_v41  ;;  %v3196_v50 = vld [vmem:[#allocation7 + $0x4c] sm:$0xf]  ;;  %v2204_v54 = vor.u32 %v3200_v46, %v2203_v45  ;;  %v2408_v18 = vor.u32 %v3245_v9, %v2405_v10  ;;  %v3241_v20 = vld [vmem:[#allocation7 + $0x1ac] sm:$0xf0] }
  0x45   :  { %v3264_v49 = vld [vmem:[#allocation7 + $0x264] sm:$0xf0]  ;;  %v2205_v51 = vld [vmem:[#allocation7 + $0x68] sm:$0xf0]  ;;  %v2629_v27 = vld [vmem:[#allocation7 + $0x3b0] sm:$0xf0] }
  0x46   :  { %955 = vmatpush.bf16.msrb.mxu1 %v2556_v19  ;;  %983 = vmatpush.bf16.msrb.mxu3 %v2560_v24  ;;  %v3260_v52 = vld [vmem:[#allocation7 + $0x24c] sm:$0xf]  ;;  %v2171_v55 = vld [vmem:[#allocation7 + $0x8] sm:$0xf]  ;;  %v2460_v58 = vor.u32 %v3264_v49, %v2459_v47  ;;  %v2208_v59 = vor.u32 %v3196_v50, %v2205_v51  ;;  %v2371_v19 = vld [vmem:[#allocation7 + $0x190] sm:$0xf]  ;;  %v2632_v34 = vor.u32 %v3301_v26, %v2629_v27 }
  0x47   :  { %v2461_v53 = vld [vmem:[#allocation7 + $0x268] sm:$0xf0]  ;;  %v3192_v57 = vld [vmem:[#allocation7 + $0x24] sm:$0xf0]  ;;  %v3237_v24 = vld [vmem:[#allocation7 + $0x194] sm:$0xf]  ;;  %v2372_v28 = vor.u32 %v3241_v20, %v2371_v19 }
  0x48   :  { %942 = vmatpush.bf16.msrb.mxu0 %v2268_v30  ;;  %970 = vmatpush.bf16.msrb.mxu2 %v2272_v32  ;;  %v2427_v60 = vld [vmem:[#allocation7 + $0x208] sm:$0xf]  ;;  %v3188_v62 = vld [vmem:[#allocation7 + $0xc] sm:$0xf]  ;;  %v2464_v0 = vor.u32 %v3260_v52, %v2461_v53  ;;  %v2172_v7 = vor.u32 %v3192_v57, %v2171_v55  ;;  %v2376_v30 = vor.u32 %v3237_v24, %v2373_v25  ;;  %v3233_v32 = vld [vmem:[#allocation7 + $0x16c] sm:$0xf0] }
  0x49   :  { %v3256_v61 = vld [vmem:[#allocation7 + $0x224] sm:$0xf0]  ;;  %v2173_v1 = vld [vmem:[#allocation7 + $0x28] sm:$0xf0]  ;;  %v2595_v33 = vld [vmem:[#allocation7 + $0x350] sm:$0xf] }
  0x4a   :  { %956 = vmatpush.bf16.msrb.mxu1 %v2524_v31  ;;  %984 = vmatpush.bf16.msrb.mxu3 %v2528_v36  ;;  %v3252_v2 = vld [vmem:[#allocation7 + $0x20c] sm:$0xf]  ;;  %v2428_v11 = vor.u32 %v3256_v61, %v2427_v60  ;;  %v2176_v12 = vor.u32 %v3188_v62, %v2173_v1  ;;  %v2339_v31 = vld [vmem:[#allocation7 + $0x150] sm:$0xf]  ;;  %v3229_v36 = vld [vmem:[#allocation7 + $0x154] sm:$0xf] }
  0x4b   :  { %v2429_v3 = vld [vmem:[#allocation7 + $0x228] sm:$0xf0]  ;;  %v3297_v35 = vld [vmem:[#allocation7 + $0x36c] sm:$0xf0]  ;;  %v2341_v37 = vld [vmem:[#allocation7 + $0x170] sm:$0xf0]  ;;  %v2340_v40 = vor.u32 %v3233_v32, %v2339_v31 }
  0x4c   :  { %943 = vmatpush.bf16.msrb.mxu0 %v2236_v42  ;;  %971 = vmatpush.bf16.msrb.mxu2 %v2240_v44  ;;  %v2432_v15 = vor.u32 %v3252_v2, %v2429_v3  ;;  %v3293_v38 = vld [vmem:[#allocation7 + $0x354] sm:$0xf]  ;;  %v2596_v41 = vor.u32 %v3297_v35, %v2595_v33  ;;  %v2344_v42 = vor.u32 %v3229_v36, %v2341_v37  ;;  %v3225_v44 = vld [vmem:[#allocation7 + $0x12c] sm:$0xf0] }
  0x4d   :  { %v2597_v39 = vld [vmem:[#allocation7 + $0x370] sm:$0xf0]  ;;  %v2563_v45 = vld [vmem:[#allocation7 + $0x310] sm:$0xf] }
  0x4e   :  { %957 = vmatpush.bf16.msrb.mxu1 %v2492_v43  ;;  %985 = vmatpush.bf16.msrb.mxu3 %v2496_v48  ;;  %v2307_v43 = vld [vmem:[#allocation7 + $0x110] sm:$0xf]  ;;  %v2600_v46 = vor.u32 %v3293_v38, %v2597_v39  ;;  %v3221_v48 = vld [vmem:[#allocation7 + $0x114] sm:$0xf]  ;;  %v2411_v38 = vld [vmem:[#allocation7 + $0x1d8] sm:$0xf] }
  0x4f   :  { %v3289_v47 = vld [vmem:[#allocation7 + $0x32c] sm:$0xf0]  ;;  %v2309_v49 = vld [vmem:[#allocation7 + $0x130] sm:$0xf0]  ;;  %v2308_v52 = vor.u32 %v3225_v44, %v2307_v43  ;;  %v3250_v39 = vld [vmem:[#allocation7 + $0x1f4] sm:$0xf0] }
  0x50   :  { %944 = vmatpush.bf16.msrb.mxu0 %v2204_v54  ;;  %972 = vmatpush.bf16.msrb.mxu2 %v2208_v59  ;;  %v3285_v50 = vld [vmem:[#allocation7 + $0x314] sm:$0xf]  ;;  %v2564_v53 = vor.u32 %v3289_v47, %v2563_v45  ;;  %v2312_v54 = vor.u32 %v3221_v48, %v2309_v49  ;;  %v2275_v55 = vld [vmem:[#allocation7 + $0xd0] sm:$0xf]  ;;  %v3246_v43 = vld [vmem:[#allocation7 + $0x1dc] sm:$0xf] }
  0x51   :  { %v2565_v51 = vld [vmem:[#allocation7 + $0x330] sm:$0xf0]  ;;  %v3217_v57 = vld [vmem:[#allocation7 + $0xec] sm:$0xf0]  ;;  %v2413_v44 = vld [vmem:[#allocation7 + $0x1f8] sm:$0xf0] }
  0x52   :  { %958 = vmatpush.bf16.msrb.mxu1 %v2460_v58  ;;  %986 = vmatpush.bf16.msrb.mxu3 %v2464_v0  ;;  %v2531_v58 = vld [vmem:[#allocation7 + $0x2d0] sm:$0xf]  ;;  %v2568_v59 = vor.u32 %v3285_v50, %v2565_v51  ;;  %v3213_v61 = vld [vmem:[#allocation7 + $0xd4] sm:$0xf]  ;;  %v2276_v2 = vor.u32 %v3217_v57, %v2275_v55  ;;  %v3310_v47 = vld [vmem:[#allocation7 + $0x3dc] sm:$0xf]  ;;  %v2412_v50 = vor.u32 %v3250_v39, %v2411_v38 }
  0x53   :  { %v3281_v60 = vld [vmem:[#allocation7 + $0x2ec] sm:$0xf0]  ;;  %v2277_v62 = vld [vmem:[#allocation7 + $0xf0] sm:$0xf0]  ;;  %v2669_v48 = vld [vmem:[#allocation7 + $0x3f8] sm:$0xf0] }
  0x54   :  { %945 = vmatpush.bf16.msrb.mxu0 %v2172_v7  ;;  %973 = vmatpush.bf16.msrb.mxu2 %v2176_v12  ;;  %v3277_v0 = vld [vmem:[#allocation7 + $0x2d4] sm:$0xf]  ;;  %v2532_v3 = vor.u32 %v3281_v60, %v2531_v58  ;;  %v2280_v4 = vor.u32 %v3213_v61, %v2277_v62  ;;  %v2243_v5 = vld [vmem:[#allocation7 + $0x90] sm:$0xf]  ;;  %v2635_v55 = vld [vmem:[#allocation7 + $0x398] sm:$0xf]  ;;  %v2672_v57 = vor.u32 %v3310_v47, %v2669_v48 }
  0x55   :  { %v2533_v1 = vld [vmem:[#allocation7 + $0x2f0] sm:$0xf0]  ;;  %v3209_v6 = vld [vmem:[#allocation7 + $0xac] sm:$0xf0]  ;;  %v3306_v58 = vld [vmem:[#allocation7 + $0x3b4] sm:$0xf0] }
  0x56   :  { %959 = vmatpush.bf16.msrb.mxu1 %v2428_v11  ;;  %987 = vmatpush.bf16.msrb.mxu3 %v2432_v15  ;;  %v2499_v7 = vld [vmem:[#allocation7 + $0x290] sm:$0xf]  ;;  %v2536_v8 = vor.u32 %v3277_v0, %v2533_v1  ;;  %v3205_v10 = vld [vmem:[#allocation7 + $0x94] sm:$0xf]  ;;  %v2244_v14 = vor.u32 %v3209_v6, %v2243_v5  ;;  %v2381_v60 = vld [vmem:[#allocation7 + $0x1b8] sm:$0xf0]  ;;  %v2636_v1 = vor.u32 %v3306_v58, %v2635_v55 }
  0x57   :  { %946 = vmatmul.bf16.vlgmr.msrb.gmra.mxu0 %v3640_v56  ;;  %974 = vmatmul.bf16.vlgmr.msrb.gmra.mxu2 %v3640_v56  ;;  %v3273_v9 = vld [vmem:[#allocation7 + $0x2ac] sm:$0xf0]  ;;  %v2245_v11 = vld [vmem:[#allocation7 + $0xb0] sm:$0xf0]  ;;  %v3302_v61 = vld [vmem:[#allocation7 + $0x39c] sm:$0xf] }
  0x58   :  { %994 = vmatpush.bf16.msra.mxu0 %v2404_v16  ;;  %1022 = vmatpush.bf16.msra.mxu2 %v2408_v18  ;;  %v3269_v12 = vld [vmem:[#allocation7 + $0x294] sm:$0xf]  ;;  %v2500_v15 = vor.u32 %v3273_v9, %v2499_v7  ;;  %v2248_v16 = vor.u32 %v3205_v10, %v2245_v11  ;;  %v3201_v18 = vld [vmem:[#allocation7 + $0x6c] sm:$0xf0]  ;;  %v2637_v62 = vld [vmem:[#allocation7 + $0x3b8] sm:$0xf0] }
  0x59   :  { %960 = vmatmul.bf16.vlgmr.msrb.gmra.mxu1 %v3642_v63  ;;  %988 = vmatmul.bf16.vlgmr.msrb.gmra.mxu3 %v3642_v63  ;;  %v2501_v13 = vld [vmem:[#allocation7 + $0x2b0] sm:$0xf0]  ;;  %v2467_v19 = vld [vmem:[#allocation7 + $0x250] sm:$0xf]  ;;  %v2603_v5 = vld [vmem:[#allocation7 + $0x358] sm:$0xf]  ;;  %v2640_v6 = vor.u32 %v3302_v61, %v2637_v62 }
  0x5a   :  { %1008 = vmatpush.bf16.msra.mxu1 %v2660_v17  ;;  %1036 = vmatpush.bf16.msra.mxu3 %v2664_v22  ;;  %v2211_v17 = vld [vmem:[#allocation7 + $0x50] sm:$0xf]  ;;  %v2504_v20 = vor.u32 %v3269_v12, %v2501_v13  ;;  %v3197_v22 = vld [vmem:[#allocation7 + $0x54] sm:$0xf]  ;;  %v3298_v7 = vld [vmem:[#allocation7 + $0x374] sm:$0xf0] }
  0x5b   :  { %v3265_v21 = vld [vmem:[#allocation7 + $0x26c] sm:$0xf0]  ;;  %v2213_v23 = vld [vmem:[#allocation7 + $0x70] sm:$0xf0]  ;;  %v2212_v26 = vor.u32 %v3201_v18, %v2211_v17  ;;  %v2349_v9 = vld [vmem:[#allocation7 + $0x178] sm:$0xf0]  ;;  %v2604_v13 = vor.u32 %v3298_v7, %v2603_v5 }
  0x5c   :  { %995 = vmatpush.bf16.msra.mxu0 %v2372_v28  ;;  %1023 = vmatpush.bf16.msra.mxu2 %v2376_v30  ;;  %v3261_v24 = vld [vmem:[#allocation7 + $0x254] sm:$0xf]  ;;  %v2179_v27 = vld [vmem:[#allocation7 + $0x10] sm:$0xf]  ;;  %v2216_v30 = vor.u32 %v3197_v22, %v2213_v23  ;;  %v3294_v10 = vld [vmem:[#allocation7 + $0x35c] sm:$0xf] }
  0x5d   :  { %v2469_v25 = vld [vmem:[#allocation7 + $0x270] sm:$0xf0]  ;;  %v3193_v28 = vld [vmem:[#allocation7 + $0x2c] sm:$0xf0]  ;;  %v2605_v11 = vld [vmem:[#allocation7 + $0x378] sm:$0xf0] }
  0x5e   :  { %1009 = vmatpush.bf16.msra.mxu1 %v2628_v29  ;;  %1037 = vmatpush.bf16.msra.mxu3 %v2632_v34  ;;  %v2468_v29 = vor.u32 %v3265_v21, %v2467_v19  ;;  %v2435_v31 = vld [vmem:[#allocation7 + $0x210] sm:$0xf]  ;;  %v3189_v33 = vld [vmem:[#allocation7 + $0x14] sm:$0xf]  ;;  %v2472_v34 = vor.u32 %v3261_v24, %v2469_v25  ;;  %v2571_v17 = vld [vmem:[#allocation7 + $0x318] sm:$0xf]  ;;  %v2608_v18 = vor.u32 %v3294_v10, %v2605_v11 }
  0x5f   :  { %v3257_v32 = vld [vmem:[#allocation7 + $0x22c] sm:$0xf0]  ;;  %v2181_v35 = vld [vmem:[#allocation7 + $0x30] sm:$0xf0]  ;;  %v3290_v19 = vld [vmem:[#allocation7 + $0x334] sm:$0xf0] }
  0x60   :  { %996 = vmatpush.bf16.msra.mxu0 %v2340_v40  ;;  %1024 = vmatpush.bf16.msra.mxu2 %v2344_v42  ;;  %v3253_v36 = vld [vmem:[#allocation7 + $0x214] sm:$0xf]  ;;  %v2667_v40 = vld [vmem:[#allocation7 + $0x3d8] sm:$0xf]  ;;  %v2436_v45 = vor.u32 %v3257_v32, %v2435_v31  ;;  %v2317_v21 = vld [vmem:[#allocation7 + $0x138] sm:$0xf0]  ;;  %v2572_v25 = vor.u32 %v3290_v19, %v2571_v17 }
  0x61   :  { %v2437_v37 = vld [vmem:[#allocation7 + $0x230] sm:$0xf0]  ;;  %v3314_v42 = vld [vmem:[#allocation7 + $0x3f4] sm:$0xf0]  ;;  %v3286_v22 = vld [vmem:[#allocation7 + $0x31c] sm:$0xf] }
  0x62   :  { %1010 = vmatpush.bf16.msra.mxu1 %v2596_v41  ;;  %1038 = vmatpush.bf16.msra.mxu3 %v2600_v46  ;;  %v2180_v41 = vor.u32 %v3193_v28, %v2179_v27  ;;  %v2184_v46 = vor.u32 %v3189_v33, %v2181_v35  ;;  %v2440_v49 = vor.u32 %v3253_v36, %v2437_v37  ;;  %v2573_v23 = vld [vmem:[#allocation7 + $0x338] sm:$0xf0]  ;;  %v2283_v27 = vld [vmem:[#allocation7 + $0xd8] sm:$0xf]  ;;  %v3330_v11 = vld [vmem:[#allocation10 + $0x74] sm:$0xf0] }
  0x63   :  { %v2668_v51 = vor.u32 %v3314_v42, %v2667_v40  ;;  %v3218_v28 = vld [vmem:[#allocation7 + $0xf4] sm:$0xf0]  ;;  %v3214_v32 = vld [vmem:[#allocation7 + $0xdc] sm:$0xf]  ;;  %v2723_v19 = vld [vmem:[#allocation10 + $0x60] sm:$0xf] }
  0x64   :  { %997 = vmatpush.bf16.msra.mxu0 %v2308_v52  ;;  %1025 = vmatpush.bf16.msra.mxu2 %v2312_v54  ;;  %v2416_v52 = vor.u32 %v3246_v43, %v2413_v44  ;;  %v3242_v54 = vld [vmem:[#allocation7 + $0x1b4] sm:$0xf0]  ;;  %v2285_v33 = vld [vmem:[#allocation7 + $0xf8] sm:$0xf0]  ;;  %v2284_v36 = vor.u32 %v3218_v28, %v2283_v27 }
  0x65   :  { %v3282_v31 = vld [vmem:[#allocation7 + $0x2f4] sm:$0xf0]  ;;  %v2541_v35 = vld [vmem:[#allocation7 + $0x2f8] sm:$0xf0]  ;;  %v2288_v38 = vor.u32 %v3214_v32, %v2285_v33  ;;  %v3324_v32 = vld [vmem:[#allocation10 + $0x44] sm:$0xf0] }
  0x66   :  { %1011 = vmatpush.bf16.msra.mxu1 %v2564_v53  ;;  %1039 = vmatpush.bf16.msra.mxu3 %v2568_v59  ;;  %v2379_v53 = vld [vmem:[#allocation7 + $0x198] sm:$0xf]  ;;  %v3238_v59 = vld [vmem:[#allocation7 + $0x19c] sm:$0xf] }
  0x67   :  { %v2380_v0 = vor.u32 %v3242_v54, %v2379_v53  ;;  %v2251_v39 = vld [vmem:[#allocation7 + $0x98] sm:$0xf]  ;;  %v3206_v44 = vld [vmem:[#allocation7 + $0x9c] sm:$0xf] }
  0x68   :  { %998 = vmatpush.bf16.msra.mxu0 %v2276_v2  ;;  %1026 = vmatpush.bf16.msra.mxu2 %v2280_v4  ;;  %v2384_v2 = vor.u32 %v3238_v59, %v2381_v60  ;;  %v3234_v4 = vld [vmem:[#allocation7 + $0x174] sm:$0xf0]  ;;  %v2509_v47 = vld [vmem:[#allocation7 + $0x2b8] sm:$0xf0] }
  0x69   :  { %v3210_v40 = vld [vmem:[#allocation7 + $0xb4] sm:$0xf0]  ;;  %v2221_v58 = vld [vmem:[#allocation7 + $0x78] sm:$0xf0] }
  0x6a   :  { %1012 = vmatpush.bf16.msra.mxu1 %v2532_v3  ;;  %1040 = vmatpush.bf16.msra.mxu3 %v2536_v8  ;;  %v2347_v3 = vld [vmem:[#allocation7 + $0x158] sm:$0xf]  ;;  %v3230_v8 = vld [vmem:[#allocation7 + $0x15c] sm:$0xf]  ;;  %v2252_v48 = vor.u32 %v3210_v40, %v2251_v39 }
  0x6b   :  { %v2348_v12 = vor.u32 %v3234_v4, %v2347_v3  ;;  %v3274_v43 = vld [vmem:[#allocation7 + $0x2b4] sm:$0xf0]  ;;  %v3262_v59 = vld [vmem:[#allocation7 + $0x25c] sm:$0xf] }
  0x6c   :  { %999 = vmatpush.bf16.msra.mxu0 %v2244_v14  ;;  %1027 = vmatpush.bf16.msra.mxu2 %v2248_v16  ;;  %v2352_v14 = vor.u32 %v3230_v8, %v2349_v9  ;;  %v3226_v16 = vld [vmem:[#allocation7 + $0x134] sm:$0xf0]  ;;  %v2477_v60 = vld [vmem:[#allocation7 + $0x278] sm:$0xf0] }
  0x6d   :  { %v2475_v53 = vld [vmem:[#allocation7 + $0x258] sm:$0xf]  ;;  %v2480_v5 = vor.u32 %v3262_v59, %v2477_v60  ;;  %v2189_v7 = vld [vmem:[#allocation7 + $0x38] sm:$0xf0]  ;;  %v3334_v59 = vld [vmem:[#allocation10 + $0x94] sm:$0xf0] }
  0x6e   :  { %1013 = vmatpush.bf16.msra.mxu1 %v2500_v15  ;;  %1041 = vmatpush.bf16.msra.mxu3 %v2504_v20  ;;  %v2315_v15 = vld [vmem:[#allocation7 + $0x118] sm:$0xf]  ;;  %v3222_v20 = vld [vmem:[#allocation7 + $0x11c] sm:$0xf] }
  0x6f   :  { %v2316_v24 = vor.u32 %v3226_v16, %v2315_v15  ;;  %v3266_v55 = vld [vmem:[#allocation7 + $0x274] sm:$0xf0]  ;;  %v3254_v8 = vld [vmem:[#allocation7 + $0x21c] sm:$0xf] }
  0x70   :  { %1000 = vmatpush.bf16.msra.mxu0 %v2212_v26  ;;  %1028 = vmatpush.bf16.msra.mxu2 %v2216_v30  ;;  %v2320_v26 = vor.u32 %v3222_v20, %v2317_v21  ;;  %v2576_v30 = vor.u32 %v3286_v22, %v2573_v23  ;;  %v2187_v62 = vld [vmem:[#allocation7 + $0x18] sm:$0xf]  ;;  %v2445_v9 = vld [vmem:[#allocation7 + $0x238] sm:$0xf0]  ;;  %v3328_v20 = vld [vmem:[#allocation10 + $0x64] sm:$0xf0] }
  0x71   :  { %v2443_v3 = vld [vmem:[#allocation7 + $0x218] sm:$0xf]  ;;  %v2448_v17 = vor.u32 %v3254_v8, %v2445_v9  ;;  %v2787_v22 = vld [vmem:[#allocation10 + $0xe0] sm:$0xf]  ;;  %v3344_v23 = vld [vmem:[#allocation10 + $0xe4] sm:$0xf0] }
  0x72   :  { %1014 = vmatpush.bf16.msra.mxu1 %v2468_v29  ;;  %1042 = vmatpush.bf16.msra.mxu3 %v2472_v34  ;;  %v2539_v29 = vld [vmem:[#allocation7 + $0x2d8] sm:$0xf]  ;;  %v3278_v34 = vld [vmem:[#allocation7 + $0x2dc] sm:$0xf]  ;;  %v2788_v27 = vor.u32 %v3344_v23, %v2787_v22  ;;  %v3358_v8 = vld [vmem:[#allocation10 + $0x154] sm:$0xf0] }
  0x73   :  { %v2540_v37 = vor.u32 %v3282_v31, %v2539_v29  ;;  %v2544_v42 = vor.u32 %v3278_v34, %v2541_v35  ;;  %v3258_v4 = vld [vmem:[#allocation7 + $0x234] sm:$0xf0]  ;;  %v3342_v29 = vld [vmem:[#allocation10 + $0xd4] sm:$0xf0]  ;;  %v2707_v31 = vld [vmem:[#allocation10 + $0x40] sm:$0xf] }
  0x74   :  { %1001 = vmatpush.bf16.msra.mxu0 %v2180_v41  ;;  %1029 = vmatpush.bf16.msra.mxu2 %v2184_v46  ;;  %v2507_v41 = vld [vmem:[#allocation7 + $0x298] sm:$0xf]  ;;  %v3270_v46 = vld [vmem:[#allocation7 + $0x29c] sm:$0xf]  ;;  %v2444_v15 = vor.u32 %v3258_v4, %v2443_v3  ;;  %v2771_v34 = vld [vmem:[#allocation10 + $0xc0] sm:$0xf] }
  0x75   :  { %v2512_v54 = vor.u32 %v3270_v46, %v2509_v47  ;;  %v2731_v10 = vld [vmem:[#allocation10 + $0x70] sm:$0xf]  ;;  %v3340_v35 = vld [vmem:[#allocation10 + $0xc4] sm:$0xf0]  ;;  %v2755_v47 = vld [vmem:[#allocation10 + $0xa0] sm:$0xf] }
  0x76   :  { %1015 = vmatpush.bf16.msra.mxu1 %v2436_v45  ;;  %1043 = vmatpush.bf16.msra.mxu3 %v2440_v49  ;;  %v2253_v45 = vld [vmem:[#allocation7 + $0xb8] sm:$0xf0]  ;;  %v2508_v49 = vor.u32 %v3274_v43, %v2507_v41  ;;  %v2779_v28 = vld [vmem:[#allocation10 + $0xd0] sm:$0xf]  ;;  %v2772_v39 = vor.u32 %v3340_v35, %v2771_v34  ;;  %v2691_v43 = vld [vmem:[#allocation10 + $0x20] sm:$0xf] }
  0x77   :  { %1002 = vmatmul.bf16.vlgmr.msra.gmra.mxu0 %v3640_v56  ;;  %1030 = vmatmul.bf16.vlgmr.msra.gmra.mxu2 %v3640_v56  ;;  %v2780_v33 = vor.u32 %v3342_v29, %v2779_v28  ;;  %v2763_v40 = vld [vmem:[#allocation10 + $0xb0] sm:$0xf]  ;;  %v3394_v3 = vld [vmem:[#allocation10 + $0x274] sm:$0xf0]  ;;  %v3356_v22 = vld [vmem:[#allocation10 + $0x144] sm:$0xf0] }
  0x78   :  { %1050 = vmatpush.bf16.msrb.mxu0 %v2412_v50  ;;  %1078 = vmatpush.bf16.msrb.mxu2 %v2416_v52  ;;  %v2256_v50 = vor.u32 %v3206_v44, %v2253_v45  ;;  %v3202_v52 = vld [vmem:[#allocation7 + $0x74] sm:$0xf0]  ;;  %v3320_v44 = vld [vmem:[#allocation10 + $0x24] sm:$0xf0]  ;;  %v3390_v28 = vld [vmem:[#allocation10 + $0x254] sm:$0xf0] }
  0x79   :  { %1016 = vmatmul.bf16.vlgmr.msra.gmra.mxu1 %v3642_v63  ;;  %1044 = vmatmul.bf16.vlgmr.msra.gmra.mxu3 %v3642_v63  ;;  %v2859_v41 = vld [vmem:[#allocation10 + $0x170] sm:$0xf]  ;;  %v2963_v35 = vld [vmem:[#allocation10 + $0x240] sm:$0xf] }
  0x7a   :  { %1064 = vmatpush.bf16.msrb.mxu1 %v2668_v51  ;;  %1092 = vmatpush.bf16.msrb.mxu3 %v2672_v57  ;;  %v2219_v51 = vld [vmem:[#allocation7 + $0x58] sm:$0xf]  ;;  %v3198_v57 = vld [vmem:[#allocation7 + $0x5c] sm:$0xf] }
  0x7b   :  { %v2220_v61 = vor.u32 %v3202_v52, %v2219_v51  ;;  %v3318_v51 = vld [vmem:[#allocation10 + $0x14] sm:$0xf0]  ;;  %v2851_v52 = vld [vmem:[#allocation10 + $0x160] sm:$0xf]  ;;  %v3051_v9 = vld [vmem:[#allocation10 + $0x2f0] sm:$0xf] }
  0x7c   :  { %1051 = vmatpush.bf16.msrb.mxu0 %v2380_v0  ;;  %1079 = vmatpush.bf16.msrb.mxu2 %v2384_v2  ;;  %v2476_v0 = vor.u32 %v3266_v55, %v2475_v53  ;;  %v3194_v2 = vld [vmem:[#allocation7 + $0x34] sm:$0xf0] }
  0x7d   :  { %v2923_v55 = vld [vmem:[#allocation10 + $0x1f0] sm:$0xf] }
  0x7e   :  { %1065 = vmatpush.bf16.msrb.mxu1 %v2636_v1  ;;  %1093 = vmatpush.bf16.msrb.mxu3 %v2640_v6  ;;  %v2224_v1 = vor.u32 %v3198_v57, %v2221_v58  ;;  %v3190_v6 = vld [vmem:[#allocation7 + $0x1c] sm:$0xf]  ;;  %v3378_v57 = vld [vmem:[#allocation10 + $0x1f4] sm:$0xf0]  ;;  %v2747_v58 = vld [vmem:[#allocation10 + $0x90] sm:$0xf] }
  0x7f   :  { %v2192_v16 = vor.u32 %v3190_v6, %v2189_v7  ;;  %v2748_v4 = vor.u32 %v3334_v59, %v2747_v58  ;;  %v2843_v6 = vld [vmem:[#allocation10 + $0x150] sm:$0xf]  ;;  %v3332_v7 = vld [vmem:[#allocation10 + $0x84] sm:$0xf0] }
  0x80   :  { %1052 = vmatpush.bf16.msrb.mxu0 %v2348_v12  ;;  %1080 = vmatpush.bf16.msrb.mxu2 %v2352_v14  ;;  %v2188_v12 = vor.u32 %v3194_v2, %v2187_v62  ;;  %v3346_v14 = vld [vmem:[#allocation10 + $0xf4] sm:$0xf0]  ;;  %v2987_v2 = vld [vmem:[#allocation10 + $0x270] sm:$0xf]  ;;  %v3404_v58 = vld [vmem:[#allocation10 + $0x2c4] sm:$0xf0] }
  0x82   :  { %1066 = vmatpush.bf16.msrb.mxu1 %v2604_v13  ;;  %1094 = vmatpush.bf16.msrb.mxu3 %v2608_v18  ;;  %v2795_v13 = vld [vmem:[#allocation10 + $0xf0] sm:$0xf]  ;;  %v2732_v18 = vor.u32 %v3330_v11, %v2731_v10  ;;  %v2844_v10 = vor.u32 %v3358_v8, %v2843_v6  ;;  %v3410_v11 = vld [vmem:[#allocation10 + $0x2f4] sm:$0xf0] }
  0x83   :  { %v2796_v21 = vor.u32 %v3346_v14, %v2795_v13  ;;  %v3376_v13 = vld [vmem:[#allocation10 + $0x1e4] sm:$0xf0]  ;;  %v3350_v8 = vld [vmem:[#allocation10 + $0x114] sm:$0xf0] }
  0x84   :  { %1053 = vmatpush.bf16.msrb.mxu0 %v2316_v24  ;;  %1081 = vmatpush.bf16.msrb.mxu2 %v2320_v26  ;;  %v2724_v24 = vor.u32 %v3328_v20, %v2723_v19  ;;  %v3326_v26 = vld [vmem:[#allocation10 + $0x54] sm:$0xf0]  ;;  %v3392_v19 = vld [vmem:[#allocation10 + $0x264] sm:$0xf0]  ;;  %v3052_v20 = vor.u32 %v3410_v11, %v3051_v9  ;;  %v3019_v11 = vld [vmem:[#allocation10 + $0x2b0] sm:$0xf] }
  0x86   :  { %1067 = vmatpush.bf16.msrb.mxu1 %v2572_v25  ;;  %1095 = vmatpush.bf16.msrb.mxu3 %v2576_v30  ;;  %v2715_v25 = vld [vmem:[#allocation10 + $0x50] sm:$0xf] }
  0x87   :  { %v2716_v30 = vor.u32 %v3326_v26, %v2715_v25  ;;  %v3408_v25 = vld [vmem:[#allocation10 + $0x2e4] sm:$0xf0] }
  0x88   :  { %1054 = vmatpush.bf16.msrb.mxu0 %v2284_v36  ;;  %1082 = vmatpush.bf16.msrb.mxu2 %v2288_v38  ;;  %v2708_v36 = vor.u32 %v3324_v32, %v2707_v31  ;;  %v3322_v38 = vld [vmem:[#allocation10 + $0x34] sm:$0xf0]  ;;  %v2907_v32 = vld [vmem:[#allocation10 + $0x1d0] sm:$0xf] }
  0x89   :  { %v3660_v31 = vld [vmem:[#allocation9] sm:$0xff] }
  0x8a   :  { %1068 = vmatpush.bf16.msrb.mxu1 %v2540_v37  ;;  %1096 = vmatpush.bf16.msrb.mxu3 %v2544_v42  ;;  %v2699_v37 = vld [vmem:[#allocation10 + $0x30] sm:$0xf] }
  0x8b   :  { %v2700_v42 = vor.u32 %v3322_v38, %v2699_v37  ;;  %v216_v37 = vperm.slane %v3660_v31, 0 }
  0x8c   :  { %1055 = vmatpush.bf16.msrb.mxu0 %v2252_v48  ;;  %1083 = vmatpush.bf16.msrb.mxu2 %v2256_v50  ;;  %v3336_v48 = vld [vmem:[#allocation10 + $0xa4] sm:$0xf0]  ;;  %v2683_v50 = vld [vmem:[#allocation10 + $0x10] sm:$0xf] }
  0x8d   :  { %v2756_v53 = vor.u32 %v3336_v48, %v2755_v47  ;;  %v2684_v62 = vor.u32 %v3318_v51, %v2683_v50  ;;  %v217_v47 = vperm.slane %v3660_v31, 1  ;;  %v3386_v50 = vld [vmem:[#allocation10 + $0x234] sm:$0xf0] }
  0x8e   :  { %1069 = vmatpush.bf16.msrb.mxu1 %v2508_v49  ;;  %1097 = vmatpush.bf16.msrb.mxu3 %v2512_v54  ;;  %v2692_v49 = vor.u32 %v3320_v44, %v2691_v43  ;;  %v3360_v54 = vld [vmem:[#allocation10 + $0x164] sm:$0xf0] }
  0x8f   :  { %v2852_v60 = vor.u32 %v3360_v54, %v2851_v52  ;;  %v3352_v54 = vld [vmem:[#allocation10 + $0x124] sm:$0xf0] }
  0x90   :  { %1056 = vmatpush.bf16.msrb.mxu0 %v2220_v61  ;;  %1084 = vmatpush.bf16.msrb.mxu2 %v2224_v1  ;;  %v2924_v61 = vor.u32 %v3378_v57, %v2923_v55  ;;  %v3316_v1 = vld [vmem:[#allocation10 + $0x4] sm:$0xf0]  ;;  %v3027_v57 = vld [vmem:[#allocation10 + $0x2c0] sm:$0xf] }
  0x92   :  { %1070 = vmatpush.bf16.msrb.mxu1 %v2476_v0  ;;  %1098 = vmatpush.bf16.msrb.mxu3 %v2480_v5  ;;  %v2675_v0 = vld [vmem:[#allocation10] sm:$0xf] }
  0x93   :  { %v2739_v5 = vld [vmem:[#allocation10 + $0x80] sm:$0xf]  ;;  %v2676_v14 = vor.u32 %v3316_v1, %v2675_v0 }
  0x94   :  { %1057 = vmatpush.bf16.msrb.mxu0 %v2188_v12  ;;  %1085 = vmatpush.bf16.msrb.mxu2 %v2192_v16  ;;  %v2915_v12 = vld [vmem:[#allocation10 + $0x1e0] sm:$0xf]  ;;  %v2988_v16 = vor.u32 %v3394_v3, %v2987_v2 }
  0x95   :  { %v2947_v3 = vld [vmem:[#allocation10 + $0x220] sm:$0xf] }
  0x96   :  { %1071 = vmatpush.bf16.msrb.mxu1 %v2444_v15  ;;  %1099 = vmatpush.bf16.msrb.mxu3 %v2448_v17  ;;  %v2916_v15 = vor.u32 %v3376_v13, %v2915_v12  ;;  %v2979_v17 = vld [vmem:[#allocation10 + $0x260] sm:$0xf]  ;;  %v3402_v12 = vld [vmem:[#allocation10 + $0x2b4] sm:$0xf0] }
  0x97   :  { %1058 = vmatmul.bf16.vlgmr.msrb.gmra.mxu0 %v3640_v56  ;;  %1086 = vmatmul.bf16.vlgmr.msrb.gmra.mxu2 %v3640_v56  ;;  %v3338_v56 = vld [vmem:[#allocation10 + $0xb4] sm:$0xf0]  ;;  %v2980_v26 = vor.u32 %v3392_v19, %v2979_v17 }
  0x98   :  { %1904 = vmatpush.bf16.msra.mxu0 %v2732_v18  ;;  %v2764_v45 = vor.u32 %v3338_v56, %v2763_v40  ;;  %v2740_v18 = vor.u32 %v3332_v7, %v2739_v5  ;;  %v3354_v40 = vld [vmem:[#allocation10 + $0x134] sm:$0xf0]  ;;  %v2811_v7 = vld [vmem:[#allocation10 + $0x110] sm:$0xf] }
  0x99   :  { %1072 = vmatmul.bf16.vlgmr.msrb.gmra.mxu1 %v3642_v63  ;;  %1100 = vmatmul.bf16.vlgmr.msrb.gmra.mxu3 %v3642_v63  ;;  %v3362_v63 = vld [vmem:[#allocation10 + $0x174] sm:$0xf0] }
  0x9a   :  { %1918 = vmatpush.bf16.msra.mxu1 %v2796_v21  ;;  %v2860_v46 = vor.u32 %v3362_v63, %v2859_v41  ;;  %1946 = vmatpush.bf16.msra.mxu3 %v2924_v61  ;;  %v2835_v21 = vld [vmem:[#allocation10 + $0x140] sm:$0xf]  ;;  %v3406_v63 = vld [vmem:[#allocation10 + $0x2d4] sm:$0xf0]  ;;  %v2891_v61 = vld [vmem:[#allocation10 + $0x1b0] sm:$0xf] }
  0x9b   :  { %v2836_v23 = vor.u32 %v3356_v22, %v2835_v21  ;;  %v3382_v21 = vld [vmem:[#allocation10 + $0x214] sm:$0xf0] }
  0x9c   :  { %1905 = vmatpush.bf16.msra.mxu0 %v2724_v24  ;;  %1932 = vmatpush.bf16.msra.mxu2 %v2860_v46  ;;  %v3043_v24 = vld [vmem:[#allocation10 + $0x2e0] sm:$0xf]  ;;  %v3372_v46 = vld [vmem:[#allocation10 + $0x1c4] sm:$0xf0] }
  0x9d   :  { %v3044_v29 = vor.u32 %v3408_v25, %v3043_v24  ;;  %v2803_v25 = vld [vmem:[#allocation10 + $0x100] sm:$0xf] }
  0x9e   :  { %1919 = vmatpush.bf16.msra.mxu1 %v2788_v27  ;;  %1947 = vmatpush.bf16.msra.mxu3 %v2916_v15  ;;  %v2971_v27 = vld [vmem:[#allocation10 + $0x250] sm:$0xf]  ;;  %v2883_v15 = vld [vmem:[#allocation10 + $0x1a0] sm:$0xf] }
  0xa0   :  { %1906 = vmatpush.bf16.msra.mxu0 %v2716_v30  ;;  %1933 = vmatpush.bf16.msra.mxu2 %v2852_v60  ;;  %v2972_v30 = vor.u32 %v3390_v28, %v2971_v27  ;;  %v3028_v60 = vor.u32 %v3404_v58, %v3027_v57  ;;  %v3011_v28 = vld [vmem:[#allocation10 + $0x2a0] sm:$0xf]  ;;  %v3424_v58 = vld [vmem:[#allocation10 + $0x364] sm:$0xf0] }
  0xa1   :  { %v3107_v57 = vld [vmem:[#allocation10 + $0x360] sm:$0xf] }
  0xa2   :  { %1920 = vmatpush.bf16.msra.mxu1 %v2780_v33  ;;  %v3374_v33 = vld [vmem:[#allocation10 + $0x1d4] sm:$0xf0] }
  0xa3   :  { %v2908_v34 = vor.u32 %v3374_v33, %v2907_v32 }
  0xa4   :  { %1907 = vmatpush.bf16.msra.mxu0 %v2708_v36  ;;  %1934 = vmatpush.bf16.msra.mxu2 %v2844_v10  ;;  %v3388_v36 = vld [vmem:[#allocation10 + $0x244] sm:$0xf0]  ;;  %v2812_v10 = vor.u32 %v3350_v8, %v2811_v7  ;;  %v2797_v8 = vld [vmem:[#allocation10 + $0xf8] sm:$0xf0] }
  0xa5   :  { %v2964_v38 = vor.u32 %v3388_v36, %v2963_v35  ;;  %1948 = vmatpush.bf16.msra.mxu3 %v2908_v34  ;;  %v2875_v34 = vld [vmem:[#allocation10 + $0x190] sm:$0xf]  ;;  %v3366_v35 = vld [vmem:[#allocation10 + $0x194] sm:$0xf0] }
  0xa6   :  { %1921 = vmatpush.bf16.msra.mxu1 %v2772_v39  ;;  %v2827_v39 = vld [vmem:[#allocation10 + $0x130] sm:$0xf] }
  0xa7   :  { %v2828_v41 = vor.u32 %v3354_v40, %v2827_v39  ;;  %v2876_v39 = vor.u32 %v3366_v35, %v2875_v34  ;;  %v2931_v40 = vld [vmem:[#allocation10 + $0x200] sm:$0xf] }
  0xa8   :  { %1908 = vmatpush.bf16.msra.mxu0 %v2700_v42  ;;  %1935 = vmatpush.bf16.msra.mxu2 %v2836_v23  ;;  %v3035_v42 = vld [vmem:[#allocation10 + $0x2d0] sm:$0xf] }
  0xa9   :  { %v3036_v44 = vor.u32 %v3406_v63, %v3035_v42  ;;  %v3115_v63 = vld [vmem:[#allocation10 + $0x370] sm:$0xf] }
  0xaa   :  { %1922 = vmatpush.bf16.msra.mxu1 %v2764_v45  ;;  %v2899_v45 = vld [vmem:[#allocation10 + $0x1c0] sm:$0xf] }
  0xab   :  { %v2900_v48 = vor.u32 %v3372_v46, %v2899_v45 }
  0xac   :  { %1909 = vmatpush.bf16.msra.mxu0 %v2692_v49  ;;  %1936 = vmatpush.bf16.msra.mxu2 %v2828_v41  ;;  %v2955_v49 = vld [vmem:[#allocation10 + $0x230] sm:$0xf] }
  0xad   :  { %v2956_v52 = vor.u32 %v3386_v50, %v2955_v49  ;;  %1949 = vmatpush.bf16.msra.mxu3 %v2900_v48  ;;  %v2733_v48 = vld [vmem:[#allocation10 + $0x78] sm:$0xf0]  ;;  %v3003_v49 = vld [vmem:[#allocation10 + $0x290] sm:$0xf]  ;;  %v3398_v50 = vld [vmem:[#allocation10 + $0x294] sm:$0xf0] }
  0xae   :  { %1923 = vmatpush.bf16.msra.mxu1 %v2756_v53  ;;  %v2819_v53 = vld [vmem:[#allocation10 + $0x120] sm:$0xf] }
  0xaf   :  { %v2820_v55 = vor.u32 %v3352_v54, %v2819_v53  ;;  %v3364_v53 = vld [vmem:[#allocation10 + $0x184] sm:$0xf0] }
  0xb0   :  { %1910 = vmatpush.bf16.msra.mxu0 %v2684_v62  ;;  %v3370_v62 = vld [vmem:[#allocation10 + $0x1b4] sm:$0xf0] }
  0xb1   :  { %1937 = vmatpush.bf16.msra.mxu2 %v2820_v55  ;;  %v2892_v2 = vor.u32 %v3370_v62, %v2891_v61  ;;  %v3108_v61 = vor.u32 %v3424_v58, %v3107_v57  ;;  %v2725_v62 = vld [vmem:[#allocation10 + $0x68] sm:$0xf0] }
  0xb2   :  { %1924 = vmatpush.bf16.msra.mxu1 %v2748_v4  ;;  %v3384_v4 = vld [vmem:[#allocation10 + $0x224] sm:$0xf0]  ;;  %v2693_v58 = vld [vmem:[#allocation10 + $0x28] sm:$0xf0] }
  0xb3   :  { %v2948_v6 = vor.u32 %v3384_v4, %v2947_v3  ;;  %1950 = vmatpush.bf16.msra.mxu3 %v2892_v2  ;;  %v3179_v4 = vld [vmem:[#allocation10 + $0x3f0] sm:$0xf] }
  0xb4   :  { %1911 = vmatpush.bf16.msra.mxu0 %v2676_v14  ;;  %v891_v56 = vpop.f32.mrf.mxu0  ;;  %v3020_v14 = vor.u32 %v3402_v12, %v3019_v11 }
  0xb5   :  { %v892_v51 = vadd.f32 %v891_v56, %v216_v37  ;;  %1938 = vmatpush.bf16.msra.mxu2 %v2812_v10  ;;  %v3380_v56 = vld [vmem:[#allocation10 + $0x204] sm:$0xf0]  ;;  %v3422_v10 = vld [vmem:[#allocation10 + $0x354] sm:$0xf0] }
  0xb6   :  { %1925 = vmatpush.bf16.msra.mxu1 %v2740_v18  ;;  %v905_v43 = vpop.f32.mrf.mxu1  ;;  %v2932_v42 = vor.u32 %v3380_v56, %v2931_v40  ;;  %v3321_v40 = vld [vmem:[#allocation10 + $0x34] sm:$0xf] }
  0xb7   :  { %v906_v5 = vadd.f32 %v905_v43, %v892_v51  ;;  %v3426_v43 = vld [vmem:[#allocation10 + $0x374] sm:$0xf0]  ;;  %v3004_v51 = vor.u32 %v3398_v50, %v3003_v49  ;;  %v2773_v50 = vld [vmem:[#allocation10 + $0xc8] sm:$0xf0] }
  0xb8   :  { %1960 = vmatpush.bf16.msrb.mxu0 %v2988_v16  ;;  %v3368_v16 = vld [vmem:[#allocation10 + $0x1a4] sm:$0xf0]  ;;  %v3116_v46 = vor.u32 %v3426_v43, %v3115_v63  ;;  %v2701_v63 = vld [vmem:[#allocation10 + $0x38] sm:$0xf0] }
  0xb9   :  { %v2884_v19 = vor.u32 %v3368_v16, %v2883_v15  ;;  %v1106_v22 = vmax.f32 %v906_v5, 0.0  ;;  %v3442_v5 = vld [vmem:[#allocation10 + $0x3f4] sm:$0xf0]  ;;  %v3171_v15 = vld [vmem:[#allocation10 + $0x3e0] sm:$0xf]  ;;  %v2704_v43 = vor.u32 %v3321_v40, %v2701_v63 }
  0xba   :  { %1974 = vmatpush.bf16.msrb.mxu1 %v3052_v20  ;;  %v919_v59 = vpop.f32.mrf.mxu2  ;;  %v2939_v20 = vld [vmem:[#allocation10 + $0x210] sm:$0xf]  ;;  %v3180_v7 = vor.u32 %v3442_v5, %v3179_v4  ;;  %v3430_v40 = vld [vmem:[#allocation10 + $0x394] sm:$0xf0] }
  0xbb   :  { %v920_v0 = vadd.f32 %v919_v59, %v217_v47  ;;  %v2940_v24 = vor.u32 %v3382_v21, %v2939_v20  ;;  %1951 = vmatpush.bf16.msra.mxu3 %v2884_v19  ;;  %v3327_v59 = vld [vmem:[#allocation10 + $0x64] sm:$0xf]  ;;  %v2789_v19 = vld [vmem:[#allocation10 + $0xe8] sm:$0xf0] }
  0xbc   :  { %1961 = vmatpush.bf16.msrb.mxu0 %v2980_v26  ;;  %v933_v1 = vpop.f32.mrf.mxu3  ;;  %v893_v9 = vpop.f32.mrf.mxu0  ;;  %v3348_v26 = vld [vmem:[#allocation10 + $0x104] sm:$0xf0]  ;;  %v2728_v2 = vor.u32 %v3327_v59, %v2725_v62 }
  0xbd   :  { %v894_v13 = vadd.f32 %v893_v9, %v216_v37  ;;  %v934_v17 = vadd.f32 %v933_v1, %v920_v0  ;;  %v2804_v27 = vor.u32 %v3348_v26, %v2803_v25  ;;  %v2995_v0 = vld [vmem:[#allocation10 + $0x280] sm:$0xf]  ;;  %v3396_v1 = vld [vmem:[#allocation10 + $0x284] sm:$0xf0]  ;;  %v3099_v9 = vld [vmem:[#allocation10 + $0x350] sm:$0xf] }
  0xbe   :  { %1975 = vmatpush.bf16.msrb.mxu1 %v3044_v29  ;;  %v907_v18 = vpop.f32.mrf.mxu1  ;;  %v3400_v29 = vld [vmem:[#allocation10 + $0x2a4] sm:$0xf0]  ;;  %v2996_v3 = vor.u32 %v3396_v1, %v2995_v0  ;;  %v3100_v12 = vor.u32 %v3422_v10, %v3099_v9  ;;  %v218_v25 = vperm.slane %v3660_v31, 2  ;;  %v3147_v0 = vld [vmem:[#allocation10 + $0x3b0] sm:$0xf] }
  0xbf   :  { %v908_v23 = vadd.f32 %v907_v18, %v894_v13  ;;  %v3012_v33 = vor.u32 %v3400_v29, %v3011_v28  ;;  %v1107_v36 = vmax.f32 %v934_v17, 0.0  ;;  %1939 = vmatpush.bf16.msra.mxu2 %v2804_v27  ;;  %1952 = vmatpush.bf16.msra.mxu3 %v2876_v39  ;;  %v3325_v13 = vld [vmem:[#allocation10 + $0x54] sm:$0xf]  ;;  %v3440_v17 = vld [vmem:[#allocation10 + $0x3e4] sm:$0xf0] }
  0xc0   :  { %1962 = vmatpush.bf16.msrb.mxu0 %v2972_v30  ;;  %v3343_v18 = vld [vmem:[#allocation10 + $0xe4] sm:$0xf]  ;;  %v3172_v20 = vor.u32 %v3440_v17, %v3171_v15  ;;  %v2709_v27 = vld [vmem:[#allocation10 + $0x48] sm:$0xf0]  ;;  %v3418_v39 = vld [vmem:[#allocation10 + $0x334] sm:$0xf0] }
  0xc1   :  { %v1114_v30 = vmax.f32 %v908_v23, 0.0  ;;  %v2792_v21 = vor.u32 %v3343_v18, %v2789_v19  ;;  %v3420_v23 = vld [vmem:[#allocation10 + $0x344] sm:$0xf0]  ;;  %v3434_v1 = vld [vmem:[#allocation10 + $0x3b4] sm:$0xf0] }
  0xc2   :  { %1976 = vmatpush.bf16.msrb.mxu1 %v3036_v44  ;;  %v921_v32 = vpop.f32.mrf.mxu2  ;;  %v3329_v44 = vld [vmem:[#allocation10 + $0x74] sm:$0xf]  ;;  %v3148_v5 = vor.u32 %v3434_v1, %v3147_v0  ;;  %v3067_v9 = vld [vmem:[#allocation10 + $0x310] sm:$0xf]  ;;  %v3414_v10 = vld [vmem:[#allocation10 + $0x314] sm:$0xf0] }
  0xc3   :  { %v922_v37 = vadd.f32 %v921_v32, %v217_v47  ;;  %v3668_v41 = vpack.c.bf16 %v1114_v30, %v1106_v22  ;;  %v2736_v47 = vor.u32 %v3329_v44, %v2733_v48  ;;  %1988 = vmatpush.bf16.msrb.mxu2 %v3116_v46  ;;  %v3091_v22 = vld [vmem:[#allocation10 + $0x340] sm:$0xf]  ;;  %v3163_v30 = vld [vmem:[#allocation10 + $0x3d0] sm:$0xf]  ;;  %v3438_v32 = vld [vmem:[#allocation10 + $0x3d4] sm:$0xf0] }
  0xc4   :  { %1963 = vmatpush.bf16.msrb.mxu0 %v2964_v38  ;;  %v935_v38 = vpop.f32.mrf.mxu3  ;;  %v3092_v26 = vor.u32 %v3420_v23, %v3091_v22  ;;  %v3164_v35 = vor.u32 %v3438_v32, %v3163_v30  ;;  %v3155_v44 = vld [vmem:[#allocation10 + $0x3c0] sm:$0xf]  ;;  %v3339_v46 = vld [vmem:[#allocation10 + $0xc4] sm:$0xf]  ;;  %v219_v48 = vperm.slane %v3660_v31, 3 }
  0xc5   :  { %v936_v45 = vadd.f32 %v935_v38, %v922_v37  ;;  %1912 = vmatmul.bf16.vlgmr.msra.gmra.mxu0 %v3668_v41  ;;  %v3083_v38 = vld [vmem:[#allocation10 + $0x330] sm:$0xf]  ;;  %v2685_v15 = vld [vmem:[#allocation10 + $0x18] sm:$0xf0]  ;;  %v3139_v17 = vld [vmem:[#allocation10 + $0x3a0] sm:$0xf] }
  0xc6   :  { %1977 = vmatpush.bf16.msrb.mxu1 %v3028_v60  ;;  %v3432_v18 = vld [vmem:[#allocation10 + $0x3a4] sm:$0xf0]  ;;  %v2757_v22 = vld [vmem:[#allocation10 + $0xa8] sm:$0xf0]  ;;  %v2845_v0 = vld [vmem:[#allocation10 + $0x158] sm:$0xf0] }
  0xc7   :  { %v1115_v54 = vmax.f32 %v936_v45, 0.0  ;;  %1989 = vmatpush.bf16.msrb.mxu2 %v3108_v61  ;;  %v3436_v45 = vld [vmem:[#allocation10 + $0x3c4] sm:$0xf0]  ;;  %v2677_v32 = vld [vmem:[#allocation10 + $0x8] sm:$0xf0] }
  0xc8   :  { %1964 = vmatpush.bf16.msrb.mxu0 %v2956_v52  ;;  %v2867_v52 = vld [vmem:[#allocation10 + $0x180] sm:$0xf]  ;;  %v3156_v49 = vor.u32 %v3436_v45, %v3155_v44 }
  0xc9   :  { %v2868_v55 = vor.u32 %v3364_v53, %v2867_v52  ;;  %v3671_v60 = vpack.c.bf16 %v1115_v54, %v1107_v36  ;;  %v2781_v36 = vld [vmem:[#allocation10 + $0xd8] sm:$0xf0]  ;;  %v3416_v52 = vld [vmem:[#allocation10 + $0x324] sm:$0xf0]  ;;  %v3319_v53 = vld [vmem:[#allocation10 + $0x24] sm:$0xf] }
  0xca   :  { %1978 = vmatpush.bf16.msrb.mxu1 %v3020_v14  ;;  %v2717_v14 = vld [vmem:[#allocation10 + $0x58] sm:$0xf0]  ;;  %v2696_v62 = vor.u32 %v3319_v53, %v2693_v58  ;;  %v2741_v53 = vld [vmem:[#allocation10 + $0x88] sm:$0xf0]  ;;  %v3377_v58 = vld [vmem:[#allocation10 + $0x1f4] sm:$0xf] }
  0xcb   :  { %1953 = vmatpush.bf16.msra.mxu3 %v2868_v55  ;;  %1926 = vmatmul.bf16.vlgmr.msra.gmra.mxu1 %v3671_v60  ;;  %v2720_v16 = vor.u32 %v3325_v13, %v2717_v14  ;;  %v3068_v14 = vor.u32 %v3414_v10, %v3067_v9  ;;  %v3373_v9 = vld [vmem:[#allocation10 + $0x1d4] sm:$0xf]  ;;  %v2909_v10 = vld [vmem:[#allocation10 + $0x1d8] sm:$0xf0] }
  0xcc   :  { %1965 = vmatpush.bf16.msrb.mxu0 %v2948_v6  ;;  %v3345_v6 = vld [vmem:[#allocation10 + $0xf4] sm:$0xf]  ;;  %1990 = vmatpush.bf16.msrb.mxu2 %v3100_v12 }
  0xcd   :  { %v2800_v11 = vor.u32 %v3345_v6, %v2797_v8  ;;  %v2765_v6 = vld [vmem:[#allocation10 + $0xb8] sm:$0xf0] }
  0xce   :  { %1979 = vmatpush.bf16.msrb.mxu1 %v3012_v33  ;;  %v3341_v33 = vld [vmem:[#allocation10 + $0xd4] sm:$0xf] }
  0xcf   :  { %2002 = vmatpush.bf16.msrb.mxu3 %v3180_v7  ;;  %v2784_v37 = vor.u32 %v3341_v33, %v2781_v36  ;;  %v3361_v33 = vld [vmem:[#allocation10 + $0x174] sm:$0xf] }
  0xd0   :  { %1966 = vmatpush.bf16.msrb.mxu0 %v2940_v24  ;;  %v3323_v24 = vld [vmem:[#allocation10 + $0x44] sm:$0xf]  ;;  %1991 = vmatpush.bf16.msrb.mxu2 %v3092_v26  ;;  %v3412_v26 = vld [vmem:[#allocation10 + $0x304] sm:$0xf0] }
  0xd1   :  { %v2712_v29 = vor.u32 %v3323_v24, %v2709_v27  ;;  %v3315_v27 = vld [vmem:[#allocation10 + $0x4] sm:$0xf] }
  0xd2   :  { %1980 = vmatpush.bf16.msrb.mxu1 %v3004_v51  ;;  %v3075_v51 = vld [vmem:[#allocation10 + $0x320] sm:$0xf] }
  0xd3   :  { %2003 = vmatpush.bf16.msrb.mxu3 %v3172_v20  ;;  %v3076_v57 = vor.u32 %v3416_v52, %v3075_v51  ;;  %v3140_v20 = vor.u32 %v3432_v18, %v3139_v17  ;;  %v3428_v51 = vld [vmem:[#allocation10 + $0x384] sm:$0xf0]  ;;  %v3331_v52 = vld [vmem:[#allocation10 + $0x84] sm:$0xf] }
  0xd4   :  { %1967 = vmatpush.bf16.msrb.mxu0 %v2932_v42  ;;  %v947_v28 = vpop.f32.mrf.mxu0  ;;  %v3084_v42 = vor.u32 %v3418_v39, %v3083_v38  ;;  %v3131_v39 = vld [vmem:[#allocation10 + $0x390] sm:$0xf]  ;;  %v3371_v18 = vld [vmem:[#allocation10 + $0x1c4] sm:$0xf] }
  0xd5   :  { %v948_v56 = vadd.f32 %v947_v28, %v218_v25  ;;  %v3132_v44 = vor.u32 %v3430_v40, %v3131_v39  ;;  %v3393_v39 = vld [vmem:[#allocation10 + $0x274] sm:$0xf]  ;;  %v2989_v40 = vld [vmem:[#allocation10 + $0x278] sm:$0xf0] }
  0xd6   :  { %1981 = vmatpush.bf16.msrb.mxu1 %v2996_v3  ;;  %v961_v34 = vpop.f32.mrf.mxu1  ;;  %1992 = vmatpush.bf16.msrb.mxu2 %v3084_v42  ;;  %v2749_v42 = vld [vmem:[#allocation10 + $0x98] sm:$0xf0] }
  0xd7   :  { %2004 = vmatpush.bf16.msrb.mxu3 %v3164_v35  ;;  %v962_v54 = vadd.f32 %v961_v34, %v948_v56  ;;  %v2861_v34 = vld [vmem:[#allocation10 + $0x178] sm:$0xf0]  ;;  %v3333_v56 = vld [vmem:[#allocation10 + $0x94] sm:$0xf] }
  0xd8   :  { %2016 = vmatpush.bf16.msra.mxu0 %v2736_v47  ;;  %v2776_v47 = vor.u32 %v3339_v46, %v2773_v50  ;;  %v2864_v38 = vor.u32 %v3361_v33, %v2861_v34  ;;  %v2752_v45 = vor.u32 %v3333_v56, %v2749_v42  ;;  %v3359_v46 = vld [vmem:[#allocation10 + $0x164] sm:$0xf] }
  0xd9   :  { %v1108_v12 = vmax.f32 %v962_v54, 0.0 }
  0xda   :  { %2030 = vmatpush.bf16.msra.mxu1 %v2800_v11  ;;  %v975_v55 = vpop.f32.mrf.mxu2  ;;  %1993 = vmatpush.bf16.msrb.mxu2 %v3076_v57  ;;  %v3317_v11 = vld [vmem:[#allocation10 + $0x14] sm:$0xf]  ;;  %v2744_v57 = vor.u32 %v3331_v52, %v2741_v53 }
  0xdb   :  { %2005 = vmatpush.bf16.msrb.mxu3 %v3156_v49  ;;  %v976_v7 = vadd.f32 %v975_v55, %v219_v48  ;;  %v2853_v49 = vld [vmem:[#allocation10 + $0x168] sm:$0xf0] }
  0xdc   :  { %2017 = vmatpush.bf16.msra.mxu0 %v2728_v2  ;;  %v949_v59 = vpop.f32.mrf.mxu0  ;;  %v989_v61 = vpop.f32.mrf.mxu3  ;;  %v3337_v2 = vld [vmem:[#allocation10 + $0xb4] sm:$0xf]  ;;  %v2856_v50 = vor.u32 %v3359_v46, %v2853_v49  ;;  %v3347_v49 = vld [vmem:[#allocation10 + $0x104] sm:$0xf] }
  0xdd   :  { %v950_v3 = vadd.f32 %v949_v59, %v218_v25  ;;  %v2768_v8 = vor.u32 %v3337_v2, %v2765_v6  ;;  %v990_v23 = vadd.f32 %v989_v61, %v976_v7  ;;  %v3059_v25 = vld [vmem:[#allocation10 + $0x300] sm:$0xf]  ;;  %v2925_v59 = vld [vmem:[#allocation10 + $0x1f8] sm:$0xf0]  ;;  %v3375_v2 = vld [vmem:[#allocation10 + $0x1e4] sm:$0xf] }
  0xde   :  { %2031 = vmatpush.bf16.msra.mxu1 %v2792_v21  ;;  %v963_v4 = vpop.f32.mrf.mxu1  ;;  %1994 = vmatpush.bf16.msrb.mxu2 %v3068_v14  ;;  %v3335_v21 = vld [vmem:[#allocation10 + $0xa4] sm:$0xf]  ;;  %v3060_v30 = vor.u32 %v3412_v26, %v3059_v25  ;;  %v2928_v61 = vor.u32 %v3377_v58, %v2925_v59  ;;  %v2837_v6 = vld [vmem:[#allocation10 + $0x148] sm:$0xf0]  ;;  %v3353_v14 = vld [vmem:[#allocation10 + $0x134] sm:$0xf] }
  0xdf   :  { %v964_v13 = vadd.f32 %v963_v4, %v950_v3  ;;  %2006 = vmatpush.bf16.msrb.mxu3 %v3148_v5  ;;  %v2760_v24 = vor.u32 %v3335_v21, %v2757_v22  ;;  %v1109_v63 = vmax.f32 %v990_v23, 0.0  ;;  %v2917_v3 = vld [vmem:[#allocation10 + $0x1e8] sm:$0xf0]  ;;  %v3355_v5 = vld [vmem:[#allocation10 + $0x144] sm:$0xf]  ;;  %v221_v23 = vperm.slane %v3660_v31, 5 }
  0xe0   :  { %2018 = vmatpush.bf16.msra.mxu0 %v2720_v16  ;;  %v2688_v16 = vor.u32 %v3317_v11, %v2685_v15  ;;  %v2920_v4 = vor.u32 %v3375_v2, %v2917_v3  ;;  %v2840_v7 = vor.u32 %v3355_v5, %v2837_v6  ;;  %v2829_v15 = vld [vmem:[#allocation10 + $0x138] sm:$0xf0]  ;;  %v3351_v21 = vld [vmem:[#allocation10 + $0x124] sm:$0xf]  ;;  %v2821_v22 = vld [vmem:[#allocation10 + $0x128] sm:$0xf0] }
  0xe1   :  { %v1116_v19 = vmax.f32 %v964_v13, 0.0  ;;  %v3365_v58 = vld [vmem:[#allocation10 + $0x194] sm:$0xf]  ;;  %v2877_v59 = vld [vmem:[#allocation10 + $0x198] sm:$0xf0] }
  0xe2   :  { %2032 = vmatpush.bf16.msra.mxu1 %v2784_v37  ;;  %v2680_v37 = vor.u32 %v3315_v27, %v2677_v32  ;;  %1995 = vmatpush.bf16.msrb.mxu2 %v3060_v30  ;;  %v3369_v27 = vld [vmem:[#allocation10 + $0x1b4] sm:$0xf]  ;;  %v3053_v5 = vld [vmem:[#allocation10 + $0x2f8] sm:$0xf0] }
  0xe3   :  { %v3676_v28 = vpack.c.bf16 %v1116_v19, %v1108_v12  ;;  %2007 = vmatpush.bf16.msrb.mxu3 %v3140_v20  ;;  %v2912_v12 = vor.u32 %v3373_v9, %v2909_v10  ;;  %v2901_v19 = vld [vmem:[#allocation10 + $0x1c8] sm:$0xf0]  ;;  %v3389_v6 = vld [vmem:[#allocation10 + $0x254] sm:$0xf] }
  0xe4   :  { %2019 = vmatpush.bf16.msra.mxu0 %v2712_v29  ;;  %v977_v29 = vpop.f32.mrf.mxu2  ;;  %v991_v36 = vpop.f32.mrf.mxu3  ;;  %v2904_v20 = vor.u32 %v3371_v18, %v2901_v19  ;;  %v2869_v9 = vld [vmem:[#allocation10 + $0x188] sm:$0xf0] }
  0xe5   :  { %v978_v35 = vadd.f32 %v977_v29, %v219_v48  ;;  %1940 = vmatmul.bf16.vlgmr.msra.gmra.mxu2 %v3676_v28  ;;  %v2893_v29 = vld [vmem:[#allocation10 + $0x1b8] sm:$0xf0]  ;;  %v2965_v18 = vld [vmem:[#allocation10 + $0x248] sm:$0xf0] }
  0xe6   :  { %2033 = vmatpush.bf16.msra.mxu1 %v2776_v47  ;;  %2044 = vmatpush.bf16.msra.mxu2 %v2864_v38  ;;  %v3123_v47 = vld [vmem:[#allocation10 + $0x380] sm:$0xf]  ;;  %v2896_v33 = vor.u32 %v3369_v27, %v2893_v29  ;;  %v222_v27 = vperm.slane %v3660_v31, 6 }
  0xe7   :  { %2008 = vmatpush.bf16.msrb.mxu3 %v3132_v44  ;;  %v3124_v55 = vor.u32 %v3428_v51, %v3123_v47  ;;  %v2885_v44 = vld [vmem:[#allocation10 + $0x1a8] sm:$0xf0]  ;;  %v2992_v47 = vor.u32 %v3393_v39, %v2989_v40  ;;  %v3391_v51 = vld [vmem:[#allocation10 + $0x264] sm:$0xf]  ;;  %v3401_v39 = vld [vmem:[#allocation10 + $0x2b4] sm:$0xf] }
  0xe8   :  { %2020 = vmatpush.bf16.msra.mxu0 %v2704_v43  ;;  %v992_v43 = vadd.f32 %v991_v36, %v978_v35  ;;  %v3349_v36 = vld [vmem:[#allocation10 + $0x114] sm:$0xf]  ;;  %v3021_v40 = vld [vmem:[#allocation10 + $0x2b8] sm:$0xf0] }
  0xea   :  { %2034 = vmatpush.bf16.msra.mxu1 %v2768_v8  ;;  %v1117_v48 = vmax.f32 %v992_v43, 0.0  ;;  %2045 = vmatpush.bf16.msra.mxu2 %v2856_v50  ;;  %v220_v8 = vperm.slane %v3660_v31, 4  ;;  %v3367_v43 = vld [vmem:[#allocation10 + $0x1a4] sm:$0xf] }
  0xeb   :  { %2009 = vmatpush.bf16.msrb.mxu3 %v3124_v55 }
  0xec   :  { %2021 = vmatpush.bf16.msra.mxu0 %v2696_v62  ;;  %v3679_v54 = vpack.c.bf16 %v1117_v48, %v1109_v63  ;;  %v3357_v62 = vld [vmem:[#allocation10 + $0x154] sm:$0xf]  ;;  %v2805_v48 = vld [vmem:[#allocation10 + $0x108] sm:$0xf0] }
  0xed   :  { %v2848_v1 = vor.u32 %v3357_v62, %v2845_v0  ;;  %v2808_v52 = vor.u32 %v3347_v49, %v2805_v48  ;;  %v2880_v0 = vor.u32 %v3365_v58, %v2877_v59  ;;  %v3425_v58 = vld [vmem:[#allocation10 + $0x374] sm:$0xf]  ;;  %v3117_v59 = vld [vmem:[#allocation10 + $0x378] sm:$0xf0] }
  0xee   :  { %2035 = vmatpush.bf16.msra.mxu1 %v2760_v24  ;;  %1954 = vmatmul.bf16.vlgmr.msra.gmra.mxu3 %v3679_v54  ;;  %v2824_v24 = vor.u32 %v3351_v21, %v2821_v22  ;;  %v3405_v21 = vld [vmem:[#allocation10 + $0x2d4] sm:$0xf]  ;;  %v3037_v22 = vld [vmem:[#allocation10 + $0x2d8] sm:$0xf0] }
  0xef   :  { %2058 = vmatpush.bf16.msra.mxu3 %v2928_v61  ;;  %2046 = vmatpush.bf16.msra.mxu2 %v2848_v1  ;;  %v3409_v1 = vld [vmem:[#allocation10 + $0x2f4] sm:$0xf] }
  0xf0   :  { %2022 = vmatpush.bf16.msra.mxu0 %v2688_v16  ;;  %v2832_v16 = vor.u32 %v3353_v14, %v2829_v15  ;;  %v3407_v15 = vld [vmem:[#allocation10 + $0x2e4] sm:$0xf] }
  0xf2   :  { %2036 = vmatpush.bf16.msra.mxu1 %v2752_v45  ;;  %v2888_v45 = vor.u32 %v3367_v43, %v2885_v44  ;;  %v223_v43 = vperm.slane %v3660_v31, 7 }
  0xf3   :  { %2059 = vmatpush.bf16.msra.mxu3 %v2920_v4  ;;  %2047 = vmatpush.bf16.msra.mxu2 %v2840_v7  ;;  %v2973_v7 = vld [vmem:[#allocation10 + $0x258] sm:$0xf0] }
  0xf4   :  { %2023 = vmatpush.bf16.msra.mxu0 %v2680_v37  ;;  %v1003_v11 = vpop.f32.mrf.mxu0  ;;  %v2813_v37 = vld [vmem:[#allocation10 + $0x118] sm:$0xf0]  ;;  %v2976_v14 = vor.u32 %v3389_v6, %v2973_v7  ;;  %v3423_v7 = vld [vmem:[#allocation10 + $0x364] sm:$0xf] }
  0xf5   :  { %v1004_v17 = vadd.f32 %v1003_v11, %v220_v8  ;;  %v2816_v56 = vor.u32 %v3349_v36, %v2813_v37 }
  0xf6   :  { %2037 = vmatpush.bf16.msra.mxu1 %v2744_v57  ;;  %v1017_v13 = vpop.f32.mrf.mxu1  ;;  %v2981_v57 = vld [vmem:[#allocation10 + $0x268] sm:$0xf0] }
  0xf7   :  { %2060 = vmatpush.bf16.msra.mxu3 %v2912_v12  ;;  %2048 = vmatpush.bf16.msra.mxu2 %v2832_v16  ;;  %v1018_v25 = vadd.f32 %v1017_v13, %v1004_v17  ;;  %v2984_v4 = vor.u32 %v3391_v51, %v2981_v57  ;;  %v3056_v12 = vor.u32 %v3409_v1, %v3053_v5  ;;  %v3045_v16 = vld [vmem:[#allocation10 + $0x2e8] sm:$0xf0]  ;;  %v3387_v17 = vld [vmem:[#allocation10 + $0x244] sm:$0xf] }
  0xf8   :  { %v3048_v19 = vor.u32 %v3407_v15, %v3045_v16 }
  0xf9   :  { %v1110_v42 = vmax.f32 %v1018_v25, 0.0 }
  0xfa   :  { %v1031_v26 = vpop.f32.mrf.mxu2 }
  0xfb   :  { %2061 = vmatpush.bf16.msra.mxu3 %v2904_v20  ;;  %2049 = vmatpush.bf16.msra.mxu2 %v2824_v24  ;;  %v1032_v38 = vadd.f32 %v1031_v26, %v221_v23  ;;  %v2968_v20 = vor.u32 %v3387_v17, %v2965_v18  ;;  %v2957_v24 = vld [vmem:[#allocation10 + $0x238] sm:$0xf0]  ;;  %v3040_v26 = vor.u32 %v3405_v21, %v3037_v22  ;;  %v3441_v17 = vld [vmem:[#allocation10 + $0x3f4] sm:$0xf] }
  0xfc   :  { %v1005_v30 = vpop.f32.mrf.mxu0  ;;  %v1045_v32 = vpop.f32.mrf.mxu3  ;;  %v3181_v18 = vld [vmem:[#allocation10 + $0x3f8] sm:$0xf0] }
  0xfd   :  { %v1006_v34 = vadd.f32 %v1005_v30, %v220_v8  ;;  %v1046_v50 = vadd.f32 %v1045_v32, %v1032_v38  ;;  %v3363_v8 = vld [vmem:[#allocation10 + $0x184] sm:$0xf] }
  0xfe   :  { %v1019_v35 = vpop.f32.mrf.mxu1  ;;  %v2872_v11 = vor.u32 %v3363_v8, %v2869_v9  ;;  %v3403_v32 = vld [vmem:[#allocation10 + $0x2c4] sm:$0xf]  ;;  %v3109_v8 = vld [vmem:[#allocation10 + $0x368] sm:$0xf0] }
  0xff   :  { %v1020_v63 = vadd.f32 %v1019_v35, %v1006_v34  ;;  %2062 = vmatpush.bf16.msra.mxu3 %v2896_v33  ;;  %2050 = vmatpush.bf16.msra.mxu2 %v2816_v56  ;;  %v1111_v2 = vmax.f32 %v1046_v50, 0.0  ;;  %v3029_v33 = vld [vmem:[#allocation10 + $0x2c8] sm:$0xf0]  ;;  %v3383_v34 = vld [vmem:[#allocation10 + $0x224] sm:$0xf]  ;;  %v3112_v16 = vor.u32 %v3423_v7, %v3109_v8 }
 0x100   :  { %v2949_v35 = vld [vmem:[#allocation10 + $0x228] sm:$0xf0]  ;;  %v3032_v36 = vor.u32 %v3403_v32, %v3029_v33  ;;  %v3381_v56 = vld [vmem:[#allocation10 + $0x214] sm:$0xf] }
 0x101   :  { %v1118_v46 = vmax.f32 %v1020_v63, 0.0  ;;  %v2952_v38 = vor.u32 %v3383_v34, %v2949_v35  ;;  %v3093_v32 = vld [vmem:[#allocation10 + $0x348] sm:$0xf0]  ;;  %v3437_v35 = vld [vmem:[#allocation10 + $0x3d4] sm:$0xf] }
 0x102   :  { %v1033_v55 = vpop.f32.mrf.mxu2 }
 0x103   :  { %v3684_v53 = vpack.c.bf16 %v1118_v46, %v1110_v42  ;;  %v1034_v61 = vadd.f32 %v1033_v55, %v221_v23  ;;  %2063 = vmatpush.bf16.msra.mxu3 %v2888_v45  ;;  %2051 = vmatpush.bf16.msra.mxu2 %v2808_v52  ;;  %v3385_v23 = vld [vmem:[#allocation10 + $0x234] sm:$0xf]  ;;  %v2941_v42 = vld [vmem:[#allocation10 + $0x218] sm:$0xf0]  ;;  %v3024_v46 = vor.u32 %v3401_v39, %v3021_v40  ;;  %v3379_v52 = vld [vmem:[#allocation10 + $0x204] sm:$0xf] }
 0x104   :  { %v1047_v62 = vpop.f32.mrf.mxu3  ;;  %v2960_v30 = vor.u32 %v3385_v23, %v2957_v24  ;;  %v2944_v50 = vor.u32 %v3381_v56, %v2941_v42  ;;  %v2933_v55 = vld [vmem:[#allocation10 + $0x208] sm:$0xf0]  ;;  %v3184_v24 = vor.u32 %v3441_v17, %v3181_v18  ;;  %v3435_v40 = vld [vmem:[#allocation10 + $0x3c4] sm:$0xf] }
 0x105   :  { %1968 = vmatmul.bf16.vlgmr.msrb.gmra.mxu0 %v3684_v53  ;;  %v1048_v3 = vadd.f32 %v1047_v62, %v1034_v61  ;;  %v2936_v1 = vor.u32 %v3379_v52, %v2933_v55  ;;  %v3157_v56 = vld [vmem:[#allocation10 + $0x3c8] sm:$0xf0]  ;;  %v3415_v42 = vld [vmem:[#allocation10 + $0x324] sm:$0xf] }
 0x106   :  { %2072 = vmatpush.bf16.msrb.mxu0 %v2992_v47  ;;  %v3013_v47 = vld [vmem:[#allocation10 + $0x2a8] sm:$0xf0] }
 0x107   :  { %v1119_v10 = vmax.f32 %v1048_v3, 0.0  ;;  %2064 = vmatpush.bf16.msra.mxu3 %v2880_v0  ;;  %v3005_v3 = vld [vmem:[#allocation10 + $0x298] sm:$0xf0]  ;;  %v3061_v52 = vld [vmem:[#allocation10 + $0x308] sm:$0xf0] }
 0x109   :  { %v3687_v13 = vpack.c.bf16 %v1119_v10, %v1111_v2  ;;  %v3397_v2 = vld [vmem:[#allocation10 + $0x294] sm:$0xf] }
 0x10a   :  { %2073 = vmatpush.bf16.msrb.mxu0 %v2984_v4  ;;  %v3120_v4 = vor.u32 %v3425_v58, %v3117_v59  ;;  %v3133_v58 = vld [vmem:[#allocation10 + $0x398] sm:$0xf0] }
 0x10b   :  { %1982 = vmatmul.bf16.vlgmr.msrb.gmra.mxu1 %v3687_v13  ;;  %2065 = vmatpush.bf16.msra.mxu3 %v2872_v11 }
 0x10c   :  { %2086 = vmatpush.bf16.msrb.mxu1 %v3056_v12  ;;  %v3395_v12 = vld [vmem:[#allocation10 + $0x284] sm:$0xf] }
 0x10e   :  { %2074 = vmatpush.bf16.msrb.mxu0 %v2976_v14  ;;  %v2997_v14 = vld [vmem:[#allocation10 + $0x288] sm:$0xf0] }
 0x10f   :  { %v3000_v23 = vor.u32 %v3395_v12, %v2997_v14 }
 0x110   :  { %2087 = vmatpush.bf16.msrb.mxu1 %v3048_v19  ;;  %v3421_v19 = vld [vmem:[#allocation10 + $0x354] sm:$0xf] }
 0x112   :  { %2075 = vmatpush.bf16.msrb.mxu0 %v2968_v20  ;;  %v3101_v20 = vld [vmem:[#allocation10 + $0x358] sm:$0xf0] }
 0x114   :  { %v1059_v25 = vpop.f32.mrf.mxu0  ;;  %2088 = vmatpush.bf16.msrb.mxu1 %v3040_v26  ;;  %v3104_v26 = vor.u32 %v3421_v19, %v3101_v20 }
 0x115   :  { %2024 = vmatmul.bf16.vlgmr.msra.gmra.mxu0 %v3668_v41  ;;  %v1060_v37 = vadd.f32 %v1059_v25, %v222_v27  ;;  %v3399_v41 = vld [vmem:[#allocation10 + $0x2a4] sm:$0xf] }
 0x116   :  { %v1073_v29 = vpop.f32.mrf.mxu1  ;;  %2076 = vmatpush.bf16.msrb.mxu0 %v2960_v30  ;;  %v3016_v31 = vor.u32 %v3399_v41, %v3013_v47  ;;  %v3419_v30 = vld [vmem:[#allocation10 + $0x344] sm:$0xf]  ;;  %v3141_v47 = vld [vmem:[#allocation10 + $0x3a8] sm:$0xf0] }
 0x117   :  { %v1074_v49 = vadd.f32 %v1073_v29, %v1060_v37  ;;  %v3173_v29 = vld [vmem:[#allocation10 + $0x3e8] sm:$0xf0]  ;;  %v3096_v34 = vor.u32 %v3419_v30, %v3093_v32  ;;  %v3085_v37 = vld [vmem:[#allocation10 + $0x338] sm:$0xf0]  ;;  %v3431_v41 = vld [vmem:[#allocation10 + $0x3a4] sm:$0xf] }
 0x118   :  { %2089 = vmatpush.bf16.msrb.mxu1 %v3032_v36  ;;  %v3165_v36 = vld [vmem:[#allocation10 + $0x3d8] sm:$0xf0]  ;;  %v3144_v55 = vor.u32 %v3431_v41, %v3141_v47 }
 0x119   :  { %v1112_v62 = vmax.f32 %v1074_v49, 0.0  ;;  %v3413_v49 = vld [vmem:[#allocation10 + $0x314] sm:$0xf] }
 0x11a   :  { %v1087_v63 = vpop.f32.mrf.mxu2  ;;  %2077 = vmatpush.bf16.msrb.mxu0 %v2952_v38  ;;  %v3168_v38 = vor.u32 %v3437_v35, %v3165_v36 }
 0x11b   :  { %2038 = vmatmul.bf16.vlgmr.msra.gmra.mxu1 %v3671_v60  ;;  %v1088_v61 = vadd.f32 %v1087_v63, %v223_v43  ;;  %v3008_v60 = vor.u32 %v3397_v2, %v3005_v3  ;;  %v3077_v63 = vld [vmem:[#allocation10 + $0x328] sm:$0xf0]  ;;  %v1258_v3 = vld [vmem:[%s3713_s5] sm:$0x3]  ;;  %s3590_s5 = smov [#allocation12]  }
 0x11c   :  { %v1101_v44 = vpop.f32.mrf.mxu3  ;;  %v1061_v45 = vpop.f32.mrf.mxu0  ;;  %2090 = vmatpush.bf16.msrb.mxu1 %v3024_v46  ;;  %v3149_v46 = vld [vmem:[#allocation10 + $0x3b8] sm:$0xf0]  ;;  %s2136_s18 = sshll.u32 %s3590_s5, 4  ;;  %s2137_s18 = int_to_ptr.vmem [resolvable:$true] %s2136_s18 }
 0x11d   :  { %v1062_v48 = vadd.f32 %v1061_v45, %v222_v27  ;;  %v1102_v9 = vadd.f32 %v1101_v44, %v1088_v61  ;;  %v3439_v27 = vld [vmem:[#allocation10 + $0x3e4] sm:$0xf]  ;;  %v3080_v44 = vor.u32 %v3415_v42, %v3077_v63  ;;  %v3433_v45 = vld [vmem:[#allocation10 + $0x3b4] sm:$0xf] }
 0x11e   :  { %v1075_v51 = vpop.f32.mrf.mxu1  ;;  %2078 = vmatpush.bf16.msrb.mxu0 %v2944_v50  ;;  %v3176_v33 = vor.u32 %v3439_v27, %v3173_v29  ;;  %v3427_v61 = vld [vmem:[#allocation10 + $0x384] sm:$0xf] }
 0x11f   :  { %v1076_v57 = vadd.f32 %v1075_v51, %v1062_v48  ;;  %v1113_v21 = vmax.f32 %v1102_v9, 0.0  ;;  %v3152_v48 = vor.u32 %v3433_v45, %v3149_v46  ;;  %v3411_v51 = vld [vmem:[#allocation10 + $0x304] sm:$0xf] }
 0x120   :  { %2091 = vmatpush.bf16.msrb.mxu1 %v3016_v31  ;;  %v3125_v31 = vld [vmem:[#allocation10 + $0x388] sm:$0xf0] }
 0x121   :  { %v1120_v0 = vmax.f32 %v1076_v57, 0.0  ;;  %v3429_v57 = vld [vmem:[#allocation10 + $0x394] sm:$0xf] }
 0x122   :  { %v1089_v6 = vpop.f32.mrf.mxu2  ;;  %2079 = vmatpush.bf16.msrb.mxu0 %v2936_v1  ;;  %v3136_v59 = vor.u32 %v3429_v57, %v3133_v58 }
 0x123   :  { %v3694_v5 = vpack.c.bf16 %v1120_v0, %v1112_v62  ;;  %v1090_v10 = vadd.f32 %v1089_v6, %v223_v43  ;;  %v3160_v43 = vor.u32 %v3435_v40, %v3157_v56  ;;  %v3128_v62 = vor.u32 %v3427_v61, %v3125_v31 }
 0x124   :  { %v1103_v11 = vpop.f32.mrf.mxu3  ;;  %2092 = vmatpush.bf16.msrb.mxu1 %v3008_v60  ;;  %v1260_v6 = vperm.slane %v1258_v3, 0 }
 0x125   :  { %1996 = vmatmul.bf16.vlgmr.msrb.gmra.mxu2 %v3694_v5  ;;  %v1104_v15 = vadd.f32 %v1103_v11, %v1090_v10  ;;  %2080 = vmatmul.bf16.vlgmr.msrb.gmra.mxu0 %v3684_v53  ;;  %v3417_v53 = vld [vmem:[#allocation10 + $0x334] sm:$0xf] }
 0x126   :  { %2100 = vmatpush.bf16.msrb.mxu2 %v3120_v4  ;;  %v3088_v39 = vor.u32 %v3417_v53, %v3085_v37  ;;  %v1261_v37 = vperm.slane %v1258_v3, 1 }
 0x127   :  { %v1121_v22 = vmax.f32 %v1104_v15, 0.0 }
 0x128   :  { %2093 = vmatpush.bf16.msrb.mxu1 %v3000_v23 }
 0x129   :  { %v1129_v25 = vpack.c.bf16 %v1121_v22, %v1113_v21 }
 0x12a   :  { %2101 = vmatpush.bf16.msrb.mxu2 %v3112_v16 }
 0x12b   :  { %2010 = vmatmul.bf16.vlgmr.msrb.gmra.mxu3 %v1129_v25  ;;  %2094 = vmatmul.bf16.vlgmr.msrb.gmra.mxu1 %v3687_v13  ;;  %v3069_v13 = vld [vmem:[#allocation10 + $0x318] sm:$0xf0] }
 0x12c   :  { %2114 = vmatpush.bf16.msrb.mxu3 %v3184_v24  ;;  %v3072_v50 = vor.u32 %v3413_v49, %v3069_v13 }
 0x12e   :  { %2102 = vmatpush.bf16.msrb.mxu2 %v3104_v26 }
 0x130   :  { %2115 = vmatpush.bf16.msrb.mxu3 %v3176_v33 }
 0x132   :  { %2103 = vmatpush.bf16.msrb.mxu2 %v3096_v34 }
 0x134   :  { %2116 = vmatpush.bf16.msrb.mxu3 %v3168_v38 }
 0x135   :  { %2052 = vmatmul.bf16.vlgmr.msra.gmra.mxu2 %v3676_v28  ;;  %v3064_v28 = vor.u32 %v3411_v51, %v3061_v52 }
 0x136   :  { %2104 = vmatpush.bf16.msrb.mxu2 %v3088_v39 }
 0x138   :  { %2117 = vmatpush.bf16.msrb.mxu3 %v3160_v43 }
 0x13a   :  { %2105 = vmatpush.bf16.msrb.mxu2 %v3080_v44 }
 0x13b   :  { %2066 = vmatmul.bf16.vlgmr.msra.gmra.mxu3 %v3679_v54 }
 0x13c   :  { %2118 = vmatpush.bf16.msrb.mxu3 %v3152_v48 }
 0x13e   :  { %2106 = vmatpush.bf16.msrb.mxu2 %v3072_v50 }
 0x140   :  { %2119 = vmatpush.bf16.msrb.mxu3 %v3144_v55 }
 0x142   :  { %2107 = vmatpush.bf16.msrb.mxu2 %v3064_v28  ;;  %v1913_v0 = vpop.f32.mrf.mxu0 }
 0x143   :  { %v1914_v9 = vadd.f32 %v1913_v0, %v1260_v6 }
 0x144   :  { %2120 = vmatpush.bf16.msrb.mxu3 %v3136_v59 }
 0x145   :  { %2108 = vmatmul.bf16.vlgmr.msrb.gmra.mxu2 %v3694_v5 }
 0x148   :  { %2121 = vmatpush.bf16.msrb.mxu3 %v3128_v62  ;;  %v1927_v1 = vpop.f32.mrf.mxu1 }
 0x149   :  { %v1928_v11 = vadd.f32 %v1927_v1, %v1914_v9 }
 0x14a   :  { %v1915_v54 = vpop.f32.mrf.mxu0 }
 0x14b   :  { %2122 = vmatmul.bf16.vlgmr.msrb.gmra.mxu3 %v1129_v25  ;;  %v1916_v15 = vadd.f32 %v1915_v54, %v1260_v6 }
 0x150   :  { %v1929_v4 = vpop.f32.mrf.mxu1 }
 0x151   :  { %v1930_v20 = vadd.f32 %v1929_v4, %v1916_v15 }
 0x168   :  { %v1941_v2 = vpop.f32.mrf.mxu2 }
 0x169   :  { %v1942_v5 = vadd.f32 %v1941_v2, %v1928_v11 }
 0x170   :  { %v1943_v10 = vpop.f32.mrf.mxu2 }
 0x171   :  { %v1955_v7 = vpop.f32.mrf.mxu3  ;;  %v1944_v22 = vadd.f32 %v1943_v10, %v1930_v20 }
 0x172   :  { %v1956_v16 = vadd.f32 %v1955_v7, %v1942_v5 }
 0x179   :  { %v1957_v12 = vpop.f32.mrf.mxu3 }
 0x17a   :  { %v1958_v25 = vadd.f32 %v1957_v12, %v1944_v22 }
 0x182   :  { %v1969_v8 = vpop.f32.mrf.mxu0 }
 0x183   :  { %v1970_v18 = vadd.f32 %v1969_v8, %v1956_v16 }
 0x188   :  { %v1983_v60 = vpop.f32.mrf.mxu1 }
 0x189   :  { %v1984_v21 = vadd.f32 %v1983_v60, %v1970_v18 }
 0x18a   :  { %v1971_v14 = vpop.f32.mrf.mxu0 }
 0x18b   :  { %v1972_v30 = vadd.f32 %v1971_v14, %v1958_v25 }
 0x190   :  { %v1985_v19 = vpop.f32.mrf.mxu1 }
 0x191   :  { %v1986_v32 = vadd.f32 %v1985_v19, %v1972_v30 }
 0x192   :  { %v2025_v29 = vpop.f32.mrf.mxu0 }
 0x193   :  { %v2026_v39 = vadd.f32 %v2025_v29, %v1261_v37 }
 0x198   :  { %v2039_v33 = vpop.f32.mrf.mxu1 }
 0x199   :  { %v2040_v42 = vadd.f32 %v2039_v33, %v2026_v39 }
 0x19a   :  { %v2027_v38 = vpop.f32.mrf.mxu0 }
 0x19b   :  { %v2028_v46 = vadd.f32 %v2027_v38, %v1261_v37 }
 0x1a0   :  { %v2041_v40 = vpop.f32.mrf.mxu1 }
 0x1a1   :  { %v2042_v13 = vadd.f32 %v2041_v40, %v2028_v46 }
 0x1a2   :  { %v2081_v45 = vpop.f32.mrf.mxu0 }
 0x1a8   :  { %v1997_v17 = vpop.f32.mrf.mxu2  ;;  %v2095_v50 = vpop.f32.mrf.mxu1 }
 0x1a9   :  { %v1998_v23 = vadd.f32 %v1997_v17, %v1984_v21 }
 0x1aa   :  { %v2083_v28 = vpop.f32.mrf.mxu0 }
 0x1ae   :  { %v2011_v24 = vpop.f32.mrf.mxu3 }
 0x1af   :  { %v2012_v26 = vadd.f32 %v2011_v24, %v1998_v23 }
 0x1b0   :  { %v1999_v27 = vpop.f32.mrf.mxu2  ;;  %v2097_v61 = vpop.f32.mrf.mxu1 }
 0x1b1   :  { %2128 = vst [vmem:[#allocation12] sm:$0xff] %v2012_v26  ;;  %v2000_v34 = vadd.f32 %v1999_v27, %v1986_v32 }
 0x1b6   :  { %v2013_v35 = vpop.f32.mrf.mxu3 }
 0x1b7   :  { %v2014_v36 = vadd.f32 %v2013_v35, %v2000_v34 }
 0x1b8   :  { %v2053_v53 = vpop.f32.mrf.mxu2 }
 0x1b9   :  { %2130 = vst [vmem:[#allocation12 + $0x10] sm:$0xff] %v2014_v36  ;;  %v2054_v43 = vadd.f32 %v2053_v53, %v2040_v42 }
 0x1be   :  { %v2067_v56 = vpop.f32.mrf.mxu3 }
 0x1bf   :  { %v2068_v44 = vadd.f32 %v2067_v56, %v2054_v43 }
 0x1c0   :  { %v2055_v63 = vpop.f32.mrf.mxu2 }
 0x1c1   :  { %v2082_v48 = vadd.f32 %v2081_v45, %v2068_v44  ;;  %v2056_v47 = vadd.f32 %v2055_v63, %v2042_v13 }
 0x1c3   :  { %v2096_v52 = vadd.f32 %v2095_v50, %v2082_v48 }
 0x1c6   :  { %v2069_v49 = vpop.f32.mrf.mxu3 }
 0x1c7   :  { %v2070_v51 = vadd.f32 %v2069_v49, %v2056_v47 }
 0x1c8   :  { %v2109_v41 = vpop.f32.mrf.mxu2 }
 0x1c9   :  { %v2110_v55 = vadd.f32 %v2109_v41, %v2096_v52  ;;  %v2084_v58 = vadd.f32 %v2083_v28, %v2070_v51 }
 0x1cb   :  { %v2098_v62 = vadd.f32 %v2097_v61, %v2084_v58 }
 0x1ce   :  { %v2123_v57 = vpop.f32.mrf.mxu3 }
 0x1cf   :  { %v2124_v59 = vadd.f32 %v2123_v57, %v2110_v55 }
 0x1d0   :  { %v2111_v31 = vpop.f32.mrf.mxu2 }
 0x1d1   :  { %2129 = vst [vmem:[#allocation12 + $0x8] sm:$0xff] %v2124_v59  ;;  %v2112_v0 = vadd.f32 %v2111_v31, %v2098_v62 }
 0x1d6   :  { %v2125_v1 = vpop.f32.mrf.mxu3 }
 0x1d7   :  { %v2126_v54 = vadd.f32 %v2125_v1, %v2112_v0 }
 0x1d9   :  { %2131 = vst [vmem:[#allocation12 + $0x18] sm:$0xff] %v2126_v54 }
 0x1da   :  { %2144 = dma.vmem_to_hbm [thread:$0]  %s2137_s18, 512, %s2139_s0, [#allocation6], %s3591_s21, %s3591_s21, %s3592_s22  }
 0x1db   :  { %3580 = dma.done.wait [#allocation6], 512  }
 0x1dc   :  { %3581 = vsyncadd [#allocation6], 4294966784 }
 0x1dd   :  { %2149 = vsyncpa [#allocation5], 1 }
 0x1de   :  { %2150 = vsyncpa [#allocation8], 1 }
 0x1df   :  { %2151 = vsyncpa [#allocation11], 1 }
 0x1e0   :  { %2152 = vsyncpa [#allocation6], 1 }

</bundles_post_ra>
